<compile_context>
chip_gen: v7x
topology: tpu7x:2x2x1
jax: 0.10.0
libtpu: 0.0.40
codegen_flags: <defaults>
</compile_context>

<pallas_src>
import functools

import numpy as np
import jax
import jax.numpy as jnp
from jax import lax
from jax.experimental import pallas as pl
from jax.experimental.pallas import tpu as pltpu


# ----------------------------------------------------------------------------
# Fused kernel: conv1+pool+relu -> conv2+pool+relu -> fc1+relu -> fc2+relu -> fc3
# ----------------------------------------------------------------------------
def _fused_lenet_kernel(x_ref, tk1_ref, b1_ref, tk2_ref, b2_ref,
                        w1_ref, fb1_ref, w2_ref, fb2_ref, w3_ref, fb3_ref,
                        o_ref, *, bt):
    f32 = jnp.float32
    bf16 = jnp.bfloat16

    # ---- conv1 (1->6, 5x5) + 2x2 maxpool + bias + relu: ONE bf16 matmul -----
    # x_ref block: [2, 12, bt, 140] bf16; rows of the GEMM = (dy, ph, b),
    # K = ki*28 + iw (pre-gathered in the wrapper), tk1 cols = dx*128 + pw*6 + c.
    xk = x_ref[...].reshape(24 * bt, 140)
    s = jnp.dot(xk, tk1_ref[...], preferred_element_type=f32)     # [24*bt, 256]
    n1 = 12 * bt
    # pool over dy (row blocks) and dx (128-aligned lane halves): pure VPU max.
    m1 = jnp.maximum(jnp.maximum(s[:n1, :128], s[:n1, 128:]),
                     jnp.maximum(s[n1:, :128], s[n1:, 128:]))      # [12*bt, 128]
    a1 = jnp.maximum(m1 + b1_ref[...], 0.0).astype(bf16)          # rows=(ph,b), lane=pw*6+c

    # ---- conv2 (6->16, 5x5) + 2x2 maxpool + bias + relu ---------------------
    # 5 accumulated matmuls over ki; LHS_ki = a1 rows [ki .. ki+8) * bt, which is
    # a contiguous, sublane-aligned slice (no lane/sublane shuffles).
    # tk2[ki]: [128, 256], cols = dx*128 + qw*16 + d.
    r = jnp.dot(a1[0:8 * bt], tk2_ref[0], preferred_element_type=f32)
    for ki in range(1, 5):
        r = r + jnp.dot(a1[ki * bt:(ki + 8) * bt], tk2_ref[ki],
                        preferred_element_type=f32)               # [8*bt, 256], rows=(2*qh+dy, b)

    # ---- pool2 + bias + relu, then fc1 accumulated over the 4 qh blocks -----
    h = fb1_ref[...]                                              # [1, 128] f32
    for qh in range(4):
        r0 = r[(2 * qh) * bt:(2 * qh + 1) * bt]
        r1 = r[(2 * qh + 1) * bt:(2 * qh + 2) * bt]
        m2 = jnp.maximum(jnp.maximum(r0[:, :128], r0[:, 128:]),
                         jnp.maximum(r1[:, :128], r1[:, 128:]))   # [bt, 128]
        a2 = jnp.maximum(m2 + b2_ref[...], 0.0).astype(bf16)      # lane = qw*16 + d
        h = h + jnp.dot(a2, w1_ref[qh], preferred_element_type=f32)

    # ---- fused MLP tail (all widths zero-padded to 128 lanes) ---------------
    h = jnp.maximum(h, 0.0)
    h = jnp.maximum(jnp.dot(h.astype(bf16), w2_ref[...],
                            preferred_element_type=f32) + fb2_ref[...], 0.0)
    o_ref[...] = jnp.dot(h.astype(bf16), w3_ref[...],
                         preferred_element_type=f32) + fb3_ref[...]


# ----------------------------------------------------------------------------
# Trace-time weight packing (Toeplitz conv matrices, fc permutation, padding)
# ----------------------------------------------------------------------------
def _conv1_toeplitz(cw1):
    # cw1: [6, 1, 5, 5] -> [140, 256]; row = ki*28 + iw, col = dx*128 + pw*6 + c
    w1 = cw1.reshape(6, 5, 5)
    kj = np.arange(5)[:, None, None, None]
    iw = np.arange(28)[None, :, None, None]
    dx = np.arange(2)[None, None, :, None]
    pw = np.arange(12)[None, None, None, :]
    sel = (iw == 2 * pw + dx + kj).astype(np.float32)          # [5, 28, 2, 12]
    t = jnp.einsum('ckj,jwdp->kwdpc', w1, sel)                 # [5, 28, 2, 12, 6]
    t = t.reshape(140, 2, 72)
    return jnp.pad(t, ((0, 0), (0, 0), (0, 56))).reshape(140, 256)


def _conv2_toeplitz(cw2):
    # cw2: [16, 6, 5, 5] -> [5, 128, 256]; row = pw*6 + c (72 used, rest zero),
    # col = dx*128 + qw*16 + d (64 used per 128-lane half).
    kj = np.arange(5)[:, None, None, None]
    p = np.arange(12)[None, :, None, None]
    dx = np.arange(2)[None, None, :, None]
    qw = np.arange(4)[None, None, None, :]
    sel = (p == 2 * qw + dx + kj).astype(np.float32)           # [5, 12, 2, 4]
    t = jnp.einsum('ockj,jpxq->kpcxqo', cw2, sel)              # [5, 12, 6, 2, 4, 16]
    t = t.reshape(5, 72, 2, 64)
    t = jnp.pad(t, ((0, 0), (0, 56), (0, 0), (0, 64)))
    return t.reshape(5, 128, 256)


def _pad2(a, rows, cols):
    return jnp.pad(a, ((0, rows - a.shape[0]), (0, cols - a.shape[1])))


def _full_spec(shape):
    zeros = (0,) * len(shape)
    return pl.BlockSpec(shape, lambda i, _z=zeros: _z)


# ----------------------------------------------------------------------------
# Forward pass wrapper
# ----------------------------------------------------------------------------
@functools.partial(jax.jit, static_argnames=("block_b",))
def mnist_cnn_forward(x, params, block_b=128):
    (cw1, cb1, cw2, cb2, fw1, fb1, fw2, fb2, fw3, fb3) = params
    B = x.shape[0]
    assert x.shape[1:] == (1, 28, 28), "kernel targets the default MnistCNN config"

    # Batch tile: default 128 (amortizes per-grid-step overhead / MXU fill).
    # Small batches round up to a multiple of 8 (sublane alignment invariant).
    bt = block_b if B >= block_b else max(8, -(-B // 8) * 8)
    assert bt % 8 == 0, "batch tile must be a multiple of 8"
    b_pad = -(-B // bt) * bt
    grid = (b_pad // bt,)

    bf16 = jnp.bfloat16

    # Pre-gather the 5 shifted image rows per (dy, ph) into a lane-dense K=140
    # slab (review option (b)): removes all in-kernel lane concats for conv1 at
    # the cost of ~4.3x input bytes (trivial, and halved again by bf16).
    xb = x.reshape(B, 28, 28)
    if b_pad != B:
        xb = jnp.pad(xb, ((0, b_pad - B), (0, 0), (0, 0)))
    row_idx = (2 * np.arange(12)[None, :, None]
               + np.arange(2)[:, None, None]
               + np.arange(5)[None, None, :])                   # [2, 12, 5] -> image row
    xg = xb[:, row_idx, :]                                       # [Bpad, 2, 12, 5, 28]
    xg = xg.transpose(1, 2, 0, 3, 4).reshape(2, 12, b_pad, 140).astype(bf16)

    # Packed weights (tiny trace-time XLA work), MXU operands in bf16.
    tk1 = _conv1_toeplitz(cw1).astype(bf16)                      # [140, 256]
    b1row = jnp.pad(jnp.tile(cb1, 12), (0, 56)).reshape(1, 128)  # f32, lane = pw*6+c
    tk2 = _conv2_toeplitz(cw2).astype(bf16)                      # [5, 128, 256]
    b2row = jnp.pad(jnp.tile(cb2, 4), (0, 64)).reshape(1, 128)   # f32, lane = qw*16+d

    # fc1 split into 4 per-qh blocks (input lane = qw*16 + d) so the kernel
    # accumulates aligned 128-wide matmuls; PyTorch's NCHW flatten order
    # (d*16 + qh*4 + qw) is folded into this packing.
    fw1_r = fw1.reshape(120, 16, 4, 4)                           # [n, d, qh, qw]
    w1blk = jnp.transpose(fw1_r, (2, 3, 1, 0)).reshape(4, 64, 120)
    w1fc = jnp.zeros((4, 128, 128), jnp.float32).at[:, :64, :120].set(w1blk).astype(bf16)
    w2fc = _pad2(fw2.T, 128, 128).astype(bf16)
    w3fc = _pad2(fw3.T, 128, 128).astype(bf16)
    fb1r = _pad2(fb1.reshape(1, -1), 1, 128)                     # f32
    fb2r = _pad2(fb2.reshape(1, -1), 1, 128)
    fb3r = _pad2(fb3.reshape(1, -1), 1, 128)

    inputs = (xg, tk1, b1row, tk2, b2row, w1fc, fb1r, w2fc, fb2r, w3fc, fb3r)

    in_specs = [pl.BlockSpec((2, 12, bt, 140), lambda i: (0, 0, i, 0))]
    # Constant-index weight/bias blocks: DMA'd once by the pipeliner (index map
    # never changes across the grid).
    in_specs += [_full_spec(a.shape) for a in inputs[1:]]
    out_spec = pl.BlockSpec((bt, 128), lambda i: (i, 0))

    out = pl.pallas_call(
        functools.partial(_fused_lenet_kernel, bt=bt),
        out_shape=jax.ShapeDtypeStruct((b_pad, 128), jnp.float32),
        grid=grid,
        in_specs=in_specs,
        out_specs=out_spec,
        compiler_params=pltpu.CompilerParams(
            dimension_semantics=("parallel",),
            vmem_limit_bytes=32 * 1024 * 1024),
    )(*inputs)

    return out[:B, :10]


# ----------------------------------------------------------------------------
# Pure-JAX reference (semantics check against the PyTorch module)
# ----------------------------------------------------------------------------
def ref_forward(x, params):
    (cw1, cb1, cw2, cb2, fw1, fb1, fw2, fb2, fw3, fb3) = params
    dn = ("NCHW", "OIHW", "NCHW")

    def maxpool2x2(y):
        return lax.reduce_window(y, -jnp.inf, lax.max, (1, 1, 2, 2), (1, 1, 2, 2), "VALID")

    y = lax.conv_general_dilated(x, cw1, (1, 1), "VALID", dimension_numbers=dn)
    y = maxpool2x2(jnp.maximum(y + cb1[None, :, None, None], 0.0))
    y = lax.conv_general_dilated(y, cw2, (1, 1), "VALID", dimension_numbers=dn)
    y = maxpool2x2(jnp.maximum(y + cb2[None, :, None, None], 0.0))
    y = y.reshape(y.shape[0], -1)
    y = jnp.maximum(y @ fw1.T + fb1, 0.0)
    y = jnp.maximum(y @ fw2.T + fb2, 0.0)
    return y @ fw3.T + fb3


# ----------------------------------------------------------------------------
# Deterministic parameter init (PyTorch-default-style uniform bounds)
# ----------------------------------------------------------------------------
def init_params(key, num_classes=10, width_factor=1.0):
    c1 = int(6 * width_factor)
    c2 = int(16 * width_factor)
    h1 = int(120 * width_factor)
    h2 = int(84 * width_factor)
    flat = int(16 * width_factor * 4 * 4)

    def uni(key, shape, fan_in):
        bound = 1.0 / jnp.sqrt(fan_in)
        return jax.random.uniform(key, shape, jnp.float32, -bound, bound)

    ks = jax.random.split(key, 10)
    return (
        uni(ks[0], (c1, 1, 5, 5), 1 * 25), uni(ks[1], (c1,), 1 * 25),
        uni(ks[2], (c2, c1, 5, 5), c1 * 25), uni(ks[3], (c2,), c1 * 25),
        uni(ks[4], (h1, flat), flat), uni(ks[5], (h1,), flat),
        uni(ks[6], (h2, h1), h1), uni(ks[7], (h2,), h1),
        uni(ks[8], (num_classes, h2), h2), uni(ks[9], (num_classes,), h2),
    )


if __name__ == "__main__":
    key = jax.random.PRNGKey(0)
    k_x, k_p = jax.random.split(key)

    B = 2
    x = jax.random.normal(k_x, (B, 1, 28, 28), jnp.float32)   # MNIST-shaped NCHW
    params = init_params(k_p, num_classes=10, width_factor=1.0)

    out = mnist_cnn_forward(x, params)
    out = jax.block_until_ready(out)

    ref = ref_forward(x, params)
    assert out.shape == (B, 10), out.shape
    err = float(jnp.max(jnp.abs(out - ref)))
    # bf16 MXU inputs (f32 accumulation) => relaxed tolerance vs the f32 reference.
    assert jnp.allclose(out, ref, atol=5e-2, rtol=5e-2), err

    print("KERNEL_OK")
</pallas_src>

<mosaic_0001>
module attributes {stable_mosaic.version = 11 : i64} {
  func.func @_fused_lenet_kernel(%arg0: i32, %arg1: memref<2x12x8x140xbf16, #tpu.memory_space<vmem>>, %arg2: memref<140x256xbf16, #tpu.memory_space<vmem>>, %arg3: memref<1x128xf32, #tpu.memory_space<vmem>>, %arg4: memref<5x128x256xbf16, #tpu.memory_space<vmem>>, %arg5: memref<1x128xf32, #tpu.memory_space<vmem>>, %arg6: memref<4x128x128xbf16, #tpu.memory_space<vmem>>, %arg7: memref<1x128xf32, #tpu.memory_space<vmem>>, %arg8: memref<128x128xbf16, #tpu.memory_space<vmem>>, %arg9: memref<1x128xf32, #tpu.memory_space<vmem>>, %arg10: memref<128x128xbf16, #tpu.memory_space<vmem>>, %arg11: memref<1x128xf32, #tpu.memory_space<vmem>>, %arg12: memref<8x128xf32, #tpu.memory_space<vmem>>) attributes {dimension_semantics = [#tpu.dimension_semantics<parallel>], iteration_bounds = array<i64: 1>, scalar_prefetch = 0 : i64, scratch_operands = 0 : i64, tpu.core_type = #tpu.core_type<tc>, window_params = [{transform_indices = @transform_0, window_bounds = array<i64: 2, 12, 8, 140>}, {pipeline_mode = #tpu.pipeline_mode<synchronous>, transform_indices = @transform_1, window_bounds = array<i64: 140, 256>}, {pipeline_mode = #tpu.pipeline_mode<synchronous>, transform_indices = @transform_2, window_bounds = array<i64: 1, 128>}, {pipeline_mode = #tpu.pipeline_mode<synchronous>, transform_indices = @transform_3, window_bounds = array<i64: 5, 128, 256>}, {pipeline_mode = #tpu.pipeline_mode<synchronous>, transform_indices = @transform_4, window_bounds = array<i64: 1, 128>}, {pipeline_mode = #tpu.pipeline_mode<synchronous>, transform_indices = @transform_5, window_bounds = array<i64: 4, 128, 128>}, {pipeline_mode = #tpu.pipeline_mode<synchronous>, transform_indices = @transform_6, window_bounds = array<i64: 1, 128>}, {pipeline_mode = #tpu.pipeline_mode<synchronous>, transform_indices = @transform_7, window_bounds = array<i64: 128, 128>}, {pipeline_mode = #tpu.pipeline_mode<synchronous>, transform_indices = @transform_8, window_bounds = array<i64: 1, 128>}, {pipeline_mode = #tpu.pipeline_mode<synchronous>, transform_indices = @transform_9, window_bounds = array<i64: 128, 128>}, {pipeline_mode = #tpu.pipeline_mode<synchronous>, transform_indices = @transform_10, window_bounds = array<i64: 1, 128>}, {transform_indices = @transform_11, window_bounds = array<i64: 8, 128>}]} {
    %c0 = arith.constant 0 : index
    %c0_0 = arith.constant 0 : index
    %c0_1 = arith.constant 0 : index
    %c0_2 = arith.constant 0 : index
    %0 = vector.load %arg1[%c0, %c0_0, %c0_1, %c0_2] : memref<2x12x8x140xbf16, #tpu.memory_space<vmem>>, vector<2x12x8x140xbf16>
    %1 = vector.shape_cast %0 : vector<2x12x8x140xbf16> to vector<192x140xbf16>
    %c0_3 = arith.constant 0 : index
    %c0_4 = arith.constant 0 : index
    %2 = vector.load %arg2[%c0_3, %c0_4] : memref<140x256xbf16, #tpu.memory_space<vmem>>, vector<140x256xbf16>
    %cst = arith.constant dense<0.000000e+00> : vector<192x256xf32>
    %3 = tpu.matmul %1, %2, %cst {dimension_numbers = #tpu.dot_dimension_numbers<[1], [0], [0], [1], [0, 0, 1, 1], [], []>} : vector<192x140xbf16>, vector<140x256xbf16>, vector<192x256xf32> -> vector<192x256xf32>
    %4 = vector.extract_strided_slice %3 {offsets = [0, 0], sizes = [96, 128], strides = [1, 1]} : vector<192x256xf32> to vector<96x128xf32>
    %5 = vector.extract_strided_slice %3 {offsets = [0, 128], sizes = [96, 128], strides = [1, 1]} : vector<192x256xf32> to vector<96x128xf32>
    %6 = arith.maximumf %4, %5 : vector<96x128xf32>
    %7 = vector.extract_strided_slice %3 {offsets = [96, 0], sizes = [96, 128], strides = [1, 1]} : vector<192x256xf32> to vector<96x128xf32>
    %8 = vector.extract_strided_slice %3 {offsets = [96, 128], sizes = [96, 128], strides = [1, 1]} : vector<192x256xf32> to vector<96x128xf32>
    %9 = arith.maximumf %7, %8 : vector<96x128xf32>
    %10 = arith.maximumf %6, %9 : vector<96x128xf32>
    %c0_5 = arith.constant 0 : index
    %c0_6 = arith.constant 0 : index
    %11 = vector.load %arg3[%c0_5, %c0_6] : memref<1x128xf32, #tpu.memory_space<vmem>>, vector<1x128xf32>
    %12 = vector.broadcast %11 : vector<1x128xf32> to vector<96x128xf32>
    %13 = arith.addf %10, %12 : vector<96x128xf32>
    %cst_7 = arith.constant 0.000000e+00 : f32
    %14 = vector.broadcast %cst_7 : f32 to vector<96x128xf32>
    %15 = arith.maximumf %13, %14 : vector<96x128xf32>
    %16 = arith.truncf %15 : vector<96x128xf32> to vector<96x128xbf16>
    %17 = vector.extract_strided_slice %16 {offsets = [0, 0], sizes = [64, 128], strides = [1, 1]} : vector<96x128xbf16> to vector<64x128xbf16>
    %c0_8 = arith.constant 0 : index
    %c0_9 = arith.constant 0 : index
    %c0_10 = arith.constant 0 : index
    %18 = vector.load %arg4[%c0_8, %c0_9, %c0_10] : memref<5x128x256xbf16, #tpu.memory_space<vmem>>, vector<1x128x256xbf16>
    %19 = vector.shape_cast %18 : vector<1x128x256xbf16> to vector<128x256xbf16>
    %cst_11 = arith.constant dense<0.000000e+00> : vector<64x256xf32>
    %20 = tpu.matmul %17, %19, %cst_11 {dimension_numbers = #tpu.dot_dimension_numbers<[1], [0], [0], [1], [0, 0, 1, 1], [], []>} : vector<64x128xbf16>, vector<128x256xbf16>, vector<64x256xf32> -> vector<64x256xf32>
    %21 = vector.extract_strided_slice %16 {offsets = [8, 0], sizes = [64, 128], strides = [1, 1]} : vector<96x128xbf16> to vector<64x128xbf16>
    %c1 = arith.constant 1 : index
    %c0_12 = arith.constant 0 : index
    %c0_13 = arith.constant 0 : index
    %22 = vector.load %arg4[%c1, %c0_12, %c0_13] : memref<5x128x256xbf16, #tpu.memory_space<vmem>>, vector<1x128x256xbf16>
    %23 = vector.shape_cast %22 : vector<1x128x256xbf16> to vector<128x256xbf16>
    %cst_14 = arith.constant dense<0.000000e+00> : vector<64x256xf32>
    %24 = tpu.matmul %21, %23, %cst_14 {dimension_numbers = #tpu.dot_dimension_numbers<[1], [0], [0], [1], [0, 0, 1, 1], [], []>} : vector<64x128xbf16>, vector<128x256xbf16>, vector<64x256xf32> -> vector<64x256xf32>
    %25 = arith.addf %20, %24 : vector<64x256xf32>
    %26 = vector.extract_strided_slice %16 {offsets = [16, 0], sizes = [64, 128], strides = [1, 1]} : vector<96x128xbf16> to vector<64x128xbf16>
    %c2 = arith.constant 2 : index
    %c0_15 = arith.constant 0 : index
    %c0_16 = arith.constant 0 : index
    %27 = vector.load %arg4[%c2, %c0_15, %c0_16] : memref<5x128x256xbf16, #tpu.memory_space<vmem>>, vector<1x128x256xbf16>
    %28 = vector.shape_cast %27 : vector<1x128x256xbf16> to vector<128x256xbf16>
    %cst_17 = arith.constant dense<0.000000e+00> : vector<64x256xf32>
    %29 = tpu.matmul %26, %28, %cst_17 {dimension_numbers = #tpu.dot_dimension_numbers<[1], [0], [0], [1], [0, 0, 1, 1], [], []>} : vector<64x128xbf16>, vector<128x256xbf16>, vector<64x256xf32> -> vector<64x256xf32>
    %30 = arith.addf %25, %29 : vector<64x256xf32>
    %31 = vector.extract_strided_slice %16 {offsets = [24, 0], sizes = [64, 128], strides = [1, 1]} : vector<96x128xbf16> to vector<64x128xbf16>
    %c3 = arith.constant 3 : index
    %c0_18 = arith.constant 0 : index
    %c0_19 = arith.constant 0 : index
    %32 = vector.load %arg4[%c3, %c0_18, %c0_19] : memref<5x128x256xbf16, #tpu.memory_space<vmem>>, vector<1x128x256xbf16>
    %33 = vector.shape_cast %32 : vector<1x128x256xbf16> to vector<128x256xbf16>
    %cst_20 = arith.constant dense<0.000000e+00> : vector<64x256xf32>
    %34 = tpu.matmul %31, %33, %cst_20 {dimension_numbers = #tpu.dot_dimension_numbers<[1], [0], [0], [1], [0, 0, 1, 1], [], []>} : vector<64x128xbf16>, vector<128x256xbf16>, vector<64x256xf32> -> vector<64x256xf32>
    %35 = arith.addf %30, %34 : vector<64x256xf32>
    %36 = vector.extract_strided_slice %16 {offsets = [32, 0], sizes = [64, 128], strides = [1, 1]} : vector<96x128xbf16> to vector<64x128xbf16>
    %c4 = arith.constant 4 : index
    %c0_21 = arith.constant 0 : index
    %c0_22 = arith.constant 0 : index
    %37 = vector.load %arg4[%c4, %c0_21, %c0_22] : memref<5x128x256xbf16, #tpu.memory_space<vmem>>, vector<1x128x256xbf16>
    %38 = vector.shape_cast %37 : vector<1x128x256xbf16> to vector<128x256xbf16>
    %cst_23 = arith.constant dense<0.000000e+00> : vector<64x256xf32>
    %39 = tpu.matmul %36, %38, %cst_23 {dimension_numbers = #tpu.dot_dimension_numbers<[1], [0], [0], [1], [0, 0, 1, 1], [], []>} : vector<64x128xbf16>, vector<128x256xbf16>, vector<64x256xf32> -> vector<64x256xf32>
    %40 = arith.addf %35, %39 : vector<64x256xf32>
    %c0_24 = arith.constant 0 : index
    %c0_25 = arith.constant 0 : index
    %41 = vector.load %arg7[%c0_24, %c0_25] : memref<1x128xf32, #tpu.memory_space<vmem>>, vector<1x128xf32>
    %42 = vector.extract_strided_slice %40 {offsets = [0, 0], sizes = [8, 256], strides = [1, 1]} : vector<64x256xf32> to vector<8x256xf32>
    %43 = vector.extract_strided_slice %40 {offsets = [8, 0], sizes = [8, 256], strides = [1, 1]} : vector<64x256xf32> to vector<8x256xf32>
    %44 = vector.extract_strided_slice %42 {offsets = [0, 0], sizes = [8, 128], strides = [1, 1]} : vector<8x256xf32> to vector<8x128xf32>
    %45 = vector.extract_strided_slice %42 {offsets = [0, 128], sizes = [8, 128], strides = [1, 1]} : vector<8x256xf32> to vector<8x128xf32>
    %46 = arith.maximumf %44, %45 : vector<8x128xf32>
    %47 = vector.extract_strided_slice %43 {offsets = [0, 0], sizes = [8, 128], strides = [1, 1]} : vector<8x256xf32> to vector<8x128xf32>
    %48 = vector.extract_strided_slice %43 {offsets = [0, 128], sizes = [8, 128], strides = [1, 1]} : vector<8x256xf32> to vector<8x128xf32>
    %49 = arith.maximumf %47, %48 : vector<8x128xf32>
    %50 = arith.maximumf %46, %49 : vector<8x128xf32>
    %c0_26 = arith.constant 0 : index
    %c0_27 = arith.constant 0 : index
    %51 = vector.load %arg5[%c0_26, %c0_27] : memref<1x128xf32, #tpu.memory_space<vmem>>, vector<1x128xf32>
    %52 = vector.broadcast %51 : vector<1x128xf32> to vector<8x128xf32>
    %53 = arith.addf %50, %52 : vector<8x128xf32>
    %cst_28 = arith.constant 0.000000e+00 : f32
    %54 = vector.broadcast %cst_28 : f32 to vector<8x128xf32>
    %55 = arith.maximumf %53, %54 : vector<8x128xf32>
    %56 = arith.truncf %55 : vector<8x128xf32> to vector<8x128xbf16>
    %c0_29 = arith.constant 0 : index
    %c0_30 = arith.constant 0 : index
    %c0_31 = arith.constant 0 : index
    %57 = vector.load %arg6[%c0_29, %c0_30, %c0_31] : memref<4x128x128xbf16, #tpu.memory_space<vmem>>, vector<1x128x128xbf16>
    %58 = vector.shape_cast %57 : vector<1x128x128xbf16> to vector<128x128xbf16>
    %cst_32 = arith.constant dense<0.000000e+00> : vector<8x128xf32>
    %59 = tpu.matmul %56, %58, %cst_32 {dimension_numbers = #tpu.dot_dimension_numbers<[1], [0], [0], [1], [0, 0, 1, 1], [], []>} : vector<8x128xbf16>, vector<128x128xbf16>, vector<8x128xf32> -> vector<8x128xf32>
    %60 = vector.broadcast %41 : vector<1x128xf32> to vector<8x128xf32>
    %61 = arith.addf %60, %59 : vector<8x128xf32>
    %62 = vector.extract_strided_slice %40 {offsets = [16, 0], sizes = [8, 256], strides = [1, 1]} : vector<64x256xf32> to vector<8x256xf32>
    %63 = vector.extract_strided_slice %40 {offsets = [24, 0], sizes = [8, 256], strides = [1, 1]} : vector<64x256xf32> to vector<8x256xf32>
    %64 = vector.extract_strided_slice %62 {offsets = [0, 0], sizes = [8, 128], strides = [1, 1]} : vector<8x256xf32> to vector<8x128xf32>
    %65 = vector.extract_strided_slice %62 {offsets = [0, 128], sizes = [8, 128], strides = [1, 1]} : vector<8x256xf32> to vector<8x128xf32>
    %66 = arith.maximumf %64, %65 : vector<8x128xf32>
    %67 = vector.extract_strided_slice %63 {offsets = [0, 0], sizes = [8, 128], strides = [1, 1]} : vector<8x256xf32> to vector<8x128xf32>
    %68 = vector.extract_strided_slice %63 {offsets = [0, 128], sizes = [8, 128], strides = [1, 1]} : vector<8x256xf32> to vector<8x128xf32>
    %69 = arith.maximumf %67, %68 : vector<8x128xf32>
    %70 = arith.maximumf %66, %69 : vector<8x128xf32>
    %c0_33 = arith.constant 0 : index
    %c0_34 = arith.constant 0 : index
    %71 = vector.load %arg5[%c0_33, %c0_34] : memref<1x128xf32, #tpu.memory_space<vmem>>, vector<1x128xf32>
    %72 = vector.broadcast %71 : vector<1x128xf32> to vector<8x128xf32>
    %73 = arith.addf %70, %72 : vector<8x128xf32>
    %cst_35 = arith.constant 0.000000e+00 : f32
    %74 = vector.broadcast %cst_35 : f32 to vector<8x128xf32>
    %75 = arith.maximumf %73, %74 : vector<8x128xf32>
    %76 = arith.truncf %75 : vector<8x128xf32> to vector<8x128xbf16>
    %c1_36 = arith.constant 1 : index
    %c0_37 = arith.constant 0 : index
    %c0_38 = arith.constant 0 : index
    %77 = vector.load %arg6[%c1_36, %c0_37, %c0_38] : memref<4x128x128xbf16, #tpu.memory_space<vmem>>, vector<1x128x128xbf16>
    %78 = vector.shape_cast %77 : vector<1x128x128xbf16> to vector<128x128xbf16>
    %cst_39 = arith.constant dense<0.000000e+00> : vector<8x128xf32>
    %79 = tpu.matmul %76, %78, %cst_39 {dimension_numbers = #tpu.dot_dimension_numbers<[1], [0], [0], [1], [0, 0, 1, 1], [], []>} : vector<8x128xbf16>, vector<128x128xbf16>, vector<8x128xf32> -> vector<8x128xf32>
    %80 = arith.addf %61, %79 : vector<8x128xf32>
    %81 = vector.extract_strided_slice %40 {offsets = [32, 0], sizes = [8, 256], strides = [1, 1]} : vector<64x256xf32> to vector<8x256xf32>
    %82 = vector.extract_strided_slice %40 {offsets = [40, 0], sizes = [8, 256], strides = [1, 1]} : vector<64x256xf32> to vector<8x256xf32>
    %83 = vector.extract_strided_slice %81 {offsets = [0, 0], sizes = [8, 128], strides = [1, 1]} : vector<8x256xf32> to vector<8x128xf32>
    %84 = vector.extract_strided_slice %81 {offsets = [0, 128], sizes = [8, 128], strides = [1, 1]} : vector<8x256xf32> to vector<8x128xf32>
    %85 = arith.maximumf %83, %84 : vector<8x128xf32>
    %86 = vector.extract_strided_slice %82 {offsets = [0, 0], sizes = [8, 128], strides = [1, 1]} : vector<8x256xf32> to vector<8x128xf32>
    %87 = vector.extract_strided_slice %82 {offsets = [0, 128], sizes = [8, 128], strides = [1, 1]} : vector<8x256xf32> to vector<8x128xf32>
    %88 = arith.maximumf %86, %87 : vector<8x128xf32>
    %89 = arith.maximumf %85, %88 : vector<8x128xf32>
    %c0_40 = arith.constant 0 : index
    %c0_41 = arith.constant 0 : index
    %90 = vector.load %arg5[%c0_40, %c0_41] : memref<1x128xf32, #tpu.memory_space<vmem>>, vector<1x128xf32>
    %91 = vector.broadcast %90 : vector<1x128xf32> to vector<8x128xf32>
    %92 = arith.addf %89, %91 : vector<8x128xf32>
    %cst_42 = arith.constant 0.000000e+00 : f32
    %93 = vector.broadcast %cst_42 : f32 to vector<8x128xf32>
    %94 = arith.maximumf %92, %93 : vector<8x128xf32>
    %95 = arith.truncf %94 : vector<8x128xf32> to vector<8x128xbf16>
    %c2_43 = arith.constant 2 : index
    %c0_44 = arith.constant 0 : index
    %c0_45 = arith.constant 0 : index
    %96 = vector.load %arg6[%c2_43, %c0_44, %c0_45] : memref<4x128x128xbf16, #tpu.memory_space<vmem>>, vector<1x128x128xbf16>
    %97 = vector.shape_cast %96 : vector<1x128x128xbf16> to vector<128x128xbf16>
    %cst_46 = arith.constant dense<0.000000e+00> : vector<8x128xf32>
    %98 = tpu.matmul %95, %97, %cst_46 {dimension_numbers = #tpu.dot_dimension_numbers<[1], [0], [0], [1], [0, 0, 1, 1], [], []>} : vector<8x128xbf16>, vector<128x128xbf16>, vector<8x128xf32> -> vector<8x128xf32>
    %99 = arith.addf %80, %98 : vector<8x128xf32>
    %100 = vector.extract_strided_slice %40 {offsets = [48, 0], sizes = [8, 256], strides = [1, 1]} : vector<64x256xf32> to vector<8x256xf32>
    %101 = vector.extract_strided_slice %40 {offsets = [56, 0], sizes = [8, 256], strides = [1, 1]} : vector<64x256xf32> to vector<8x256xf32>
    %102 = vector.extract_strided_slice %100 {offsets = [0, 0], sizes = [8, 128], strides = [1, 1]} : vector<8x256xf32> to vector<8x128xf32>
    %103 = vector.extract_strided_slice %100 {offsets = [0, 128], sizes = [8, 128], strides = [1, 1]} : vector<8x256xf32> to vector<8x128xf32>
    %104 = arith.maximumf %102, %103 : vector<8x128xf32>
    %105 = vector.extract_strided_slice %101 {offsets = [0, 0], sizes = [8, 128], strides = [1, 1]} : vector<8x256xf32> to vector<8x128xf32>
    %106 = vector.extract_strided_slice %101 {offsets = [0, 128], sizes = [8, 128], strides = [1, 1]} : vector<8x256xf32> to vector<8x128xf32>
    %107 = arith.maximumf %105, %106 : vector<8x128xf32>
    %108 = arith.maximumf %104, %107 : vector<8x128xf32>
    %c0_47 = arith.constant 0 : index
    %c0_48 = arith.constant 0 : index
    %109 = vector.load %arg5[%c0_47, %c0_48] : memref<1x128xf32, #tpu.memory_space<vmem>>, vector<1x128xf32>
    %110 = vector.broadcast %109 : vector<1x128xf32> to vector<8x128xf32>
    %111 = arith.addf %108, %110 : vector<8x128xf32>
    %cst_49 = arith.constant 0.000000e+00 : f32
    %112 = vector.broadcast %cst_49 : f32 to vector<8x128xf32>
    %113 = arith.maximumf %111, %112 : vector<8x128xf32>
    %114 = arith.truncf %113 : vector<8x128xf32> to vector<8x128xbf16>
    %c3_50 = arith.constant 3 : index
    %c0_51 = arith.constant 0 : index
    %c0_52 = arith.constant 0 : index
    %115 = vector.load %arg6[%c3_50, %c0_51, %c0_52] : memref<4x128x128xbf16, #tpu.memory_space<vmem>>, vector<1x128x128xbf16>
    %116 = vector.shape_cast %115 : vector<1x128x128xbf16> to vector<128x128xbf16>
    %cst_53 = arith.constant dense<0.000000e+00> : vector<8x128xf32>
    %117 = tpu.matmul %114, %116, %cst_53 {dimension_numbers = #tpu.dot_dimension_numbers<[1], [0], [0], [1], [0, 0, 1, 1], [], []>} : vector<8x128xbf16>, vector<128x128xbf16>, vector<8x128xf32> -> vector<8x128xf32>
    %118 = arith.addf %99, %117 : vector<8x128xf32>
    %cst_54 = arith.constant 0.000000e+00 : f32
    %119 = vector.broadcast %cst_54 : f32 to vector<8x128xf32>
    %120 = arith.maximumf %118, %119 : vector<8x128xf32>
    %121 = arith.truncf %120 : vector<8x128xf32> to vector<8x128xbf16>
    %c0_55 = arith.constant 0 : index
    %c0_56 = arith.constant 0 : index
    %122 = vector.load %arg8[%c0_55, %c0_56] : memref<128x128xbf16, #tpu.memory_space<vmem>>, vector<128x128xbf16>
    %cst_57 = arith.constant dense<0.000000e+00> : vector<8x128xf32>
    %123 = tpu.matmul %121, %122, %cst_57 {dimension_numbers = #tpu.dot_dimension_numbers<[1], [0], [0], [1], [0, 0, 1, 1], [], []>} : vector<8x128xbf16>, vector<128x128xbf16>, vector<8x128xf32> -> vector<8x128xf32>
    %c0_58 = arith.constant 0 : index
    %c0_59 = arith.constant 0 : index
    %124 = vector.load %arg9[%c0_58, %c0_59] : memref<1x128xf32, #tpu.memory_space<vmem>>, vector<1x128xf32>
    %125 = vector.broadcast %124 : vector<1x128xf32> to vector<8x128xf32>
    %126 = arith.addf %123, %125 : vector<8x128xf32>
    %cst_60 = arith.constant 0.000000e+00 : f32
    %127 = vector.broadcast %cst_60 : f32 to vector<8x128xf32>
    %128 = arith.maximumf %126, %127 : vector<8x128xf32>
    %129 = arith.truncf %128 : vector<8x128xf32> to vector<8x128xbf16>
    %c0_61 = arith.constant 0 : index
    %c0_62 = arith.constant 0 : index
    %130 = vector.load %arg10[%c0_61, %c0_62] : memref<128x128xbf16, #tpu.memory_space<vmem>>, vector<128x128xbf16>
    %cst_63 = arith.constant dense<0.000000e+00> : vector<8x128xf32>
    %131 = tpu.matmul %129, %130, %cst_63 {dimension_numbers = #tpu.dot_dimension_numbers<[1], [0], [0], [1], [0, 0, 1, 1], [], []>} : vector<8x128xbf16>, vector<128x128xbf16>, vector<8x128xf32> -> vector<8x128xf32>
    %c0_64 = arith.constant 0 : index
    %c0_65 = arith.constant 0 : index
    %132 = vector.load %arg11[%c0_64, %c0_65] : memref<1x128xf32, #tpu.memory_space<vmem>>, vector<1x128xf32>
    %133 = vector.broadcast %132 : vector<1x128xf32> to vector<8x128xf32>
    %134 = arith.addf %131, %133 : vector<8x128xf32>
    %c0_66 = arith.constant 0 : index
    %c0_67 = arith.constant 0 : index
    %135 = vector.load %arg12[%c0_66, %c0_67] : memref<8x128xf32, #tpu.memory_space<vmem>>, vector<8x128xf32>
    tpu.vector_store %arg12[%c0_66, %c0_67], %134 {strides = array<i32>} : memref<8x128xf32, #tpu.memory_space<vmem>>, vector<8x128xf32>,
    return
  }
  func.func @transform_0(%arg0: i32) -> (i32, i32, i32, i32) {
    %c0_i32 = arith.constant 0 : i32
    %c0_i32_0 = arith.constant 0 : i32
    %c0_i32_1 = arith.constant 0 : i32
    %c0_i32_2 = arith.constant 0 : i32
    return %c0_i32, %c0_i32_0, %arg0, %c0_i32_1 : i32, i32, i32, i32
  }
  func.func @transform_1(%arg0: i32) -> (i32, i32) {
    %c0_i32 = arith.constant 0 : i32
    %c0_i32_0 = arith.constant 0 : i32
    %c0_i32_1 = arith.constant 0 : i32
    return %c0_i32, %c0_i32_0 : i32, i32
  }
  func.func @transform_2(%arg0: i32) -> (i32, i32) {
    %c0_i32 = arith.constant 0 : i32
    %c0_i32_0 = arith.constant 0 : i32
    %c0_i32_1 = arith.constant 0 : i32
    return %c0_i32, %c0_i32_0 : i32, i32
  }
  func.func @transform_3(%arg0: i32) -> (i32, i32, i32) {
    %c0_i32 = arith.constant 0 : i32
    %c0_i32_0 = arith.constant 0 : i32
    %c0_i32_1 = arith.constant 0 : i32
    %c0_i32_2 = arith.constant 0 : i32
    return %c0_i32, %c0_i32_0, %c0_i32_1 : i32, i32, i32
  }
  func.func @transform_4(%arg0: i32) -> (i32, i32) {
    %c0_i32 = arith.constant 0 : i32
    %c0_i32_0 = arith.constant 0 : i32
    %c0_i32_1 = arith.constant 0 : i32
    return %c0_i32, %c0_i32_0 : i32, i32
  }
  func.func @transform_5(%arg0: i32) -> (i32, i32, i32) {
    %c0_i32 = arith.constant 0 : i32
    %c0_i32_0 = arith.constant 0 : i32
    %c0_i32_1 = arith.constant 0 : i32
    %c0_i32_2 = arith.constant 0 : i32
    return %c0_i32, %c0_i32_0, %c0_i32_1 : i32, i32, i32
  }
  func.func @transform_6(%arg0: i32) -> (i32, i32) {
    %c0_i32 = arith.constant 0 : i32
    %c0_i32_0 = arith.constant 0 : i32
    %c0_i32_1 = arith.constant 0 : i32
    return %c0_i32, %c0_i32_0 : i32, i32
  }
  func.func @transform_7(%arg0: i32) -> (i32, i32) {
    %c0_i32 = arith.constant 0 : i32
    %c0_i32_0 = arith.constant 0 : i32
    %c0_i32_1 = arith.constant 0 : i32
    return %c0_i32, %c0_i32_0 : i32, i32
  }
  func.func @transform_8(%arg0: i32) -> (i32, i32) {
    %c0_i32 = arith.constant 0 : i32
    %c0_i32_0 = arith.constant 0 : i32
    %c0_i32_1 = arith.constant 0 : i32
    return %c0_i32, %c0_i32_0 : i32, i32
  }
  func.func @transform_9(%arg0: i32) -> (i32, i32) {
    %c0_i32 = arith.constant 0 : i32
    %c0_i32_0 = arith.constant 0 : i32
    %c0_i32_1 = arith.constant 0 : i32
    return %c0_i32, %c0_i32_0 : i32, i32
  }
  func.func @transform_10(%arg0: i32) -> (i32, i32) {
    %c0_i32 = arith.constant 0 : i32
    %c0_i32_0 = arith.constant 0 : i32
    %c0_i32_1 = arith.constant 0 : i32
    return %c0_i32, %c0_i32_0 : i32, i32
  }
  func.func @transform_11(%arg0: i32) -> (i32, i32) {
    %c0_i32 = arith.constant 0 : i32
    %c0_i32_0 = arith.constant 0 : i32
    return %arg0, %c0_i32 : i32, i32
  }
}

</mosaic_0001>

<bundles_post_ra>
// kernel: tile.13
= control target key start
LH: loop header
LB: loop body
LE: loop exit
PB: predicated region body
PF: predicated region fallthrough
CT: control target
= control target key end

     0   :  { %s28_s0 = inlined_call_operand.vmem [shape: f32[6], index: 0, kind: input, shape index: {}]   ;;  %s29_s1 = inlined_call_operand.vmem [shape: f32[12,6], index: 1, kind: output, shape index: {}]  }
   0x1   :  { %v4_v0 = vld [vmem:[%s28_s0] ss:$0 sm:$0xff] }
   0x2   :  { %5 = vst [vmem:[%s29_s1] sm:$0xff] %v4_v0  ;;  %8 = vst [vmem:[%s29_s1 + $0x8] sm:$0xff] %v4_v0 }

// kernel: tile.18
= control target key start
LH: loop header
LB: loop body
LE: loop exit
PB: predicated region body
PF: predicated region fallthrough
CT: control target
= control target key end

     0   :  { %s22_s0 = inlined_call_operand.vmem [shape: f32[16], index: 0, kind: input, shape index: {}]   ;;  %s23_s1 = inlined_call_operand.vmem [shape: f32[4,16], index: 1, kind: output, shape index: {}]  }
   0x1   :  { %v4_v0 = vld [vmem:[%s22_s0] ss:$0 sm:$0xff] }
   0x2   :  { %5 = vst [vmem:[%s23_s1] sm:$0xf] %v4_v0 }

// kernel: tile.14
= control target key start
LH: loop header
LB: loop body
LE: loop exit
PB: predicated region body
PF: predicated region fallthrough
CT: control target
= control target key end

     0   :  { %s99_s10 = smov 66   ;;  %s100_s11 = smov 54   ;;  %vm3_vm0 = vcmask 48128   ;;  %vm9_vm1 = vcmask 589328   ;;  %vm15_vm2 = vcmask 540128   ;;  %vm21_vm3 = vcmask 490928   ;;  %s159_s0 = inlined_call_operand.vmem [shape: f32[12,6], index: 0, kind: input, shape index: {}]   ;;  %s160_s1 = inlined_call_operand.vmem [shape: f32[72], index: 1, kind: output, shape index: {}]  }
   0x1   :  { %v77_v0 = vld [vmem:[%s159_s0 + $0xb] sm:$0x1]   ;;  %v79_v1 = vld [vmem:[%s159_s0 + $0x9] sm:$0x1]   ;;  %v78_v2 = vld [vmem:[%s159_s0 + $0xa] sm:$0x1]  }
   0x2   :  { %7 = vrot.lane.b32.xlu0 %v77_v0, %s99_s10  ;;  %19 = vrot.lane.b32.xlu1 %v79_v1, %s100_s11  ;;  %v80_v3 = vld [vmem:[%s159_s0 + $0x8] sm:$0x1]   ;;  %s101_s16 = smov 60   ;;  %s102_s17 = smov 48   ;;  %v81_v4 = vld [vmem:[%s159_s0 + $0x7] sm:$0x1]  }
   0x3   :  { %v2_v5 = vld [vmem:[%s159_s0] sm:$0x1]   ;;  %v82_v6 = vld [vmem:[%s159_s0 + $0x6] sm:$0x1]   ;;  %s103_s24 = smov 42   ;;  %s104_s25 = smov 36  }
   0x4   :  { %4 = vst.msk [vmem:[#allocation0] sm:$0x1] %vm3_vm0, %v2_v5   ;;  %v83_v7 = vld [vmem:[%s159_s0 + $0x5] sm:$0x1]   ;;  %v84_v8 = vld [vmem:[%s159_s0 + $0x4] sm:$0x1]  }
   0x5   :  { %s105_s30 = smov 30   ;;  %s106_s2 = smov 24   ;;  %v85_v9 = vld [vmem:[%s159_s0 + $0x3] sm:$0x1]   ;;  %v86_v10 = vld [vmem:[%s159_s0 + $0x2] sm:$0x1]  }
   0x6   :  { %13 = vrot.lane.b32.xlu0 %v78_v2, %s101_s16  ;;  %25 = vrot.lane.b32.xlu1 %v80_v3, %s102_s17  ;;  %s107_s7 = smov 18   ;;  %s108_s8 = smov 12   ;;  %v87_v11 = vld [vmem:[%s159_s0 + $0x1] sm:$0x1]   ;;  %vm27_vm4 = vcmask 441728   ;;  %vm33_vm5 = vcmask 392528  }
   0x7   :  { %s109_s0 = smov 6   ;;  %vm39_vm6 = vcmask 343328   ;;  %vm45_vm7 = vcmask 294128   ;;  %vm51_vm8 = vcmask 244928   ;;  %vm57_vm9 = vcmask 195728  }
   0x8   :  { %vm63_vm10 = vcmask 146528   ;;  %vm69_vm11 = vcmask 97328  }
   0xa   :  { %31 = vrot.lane.b32.xlu0 %v81_v4, %s103_s24  ;;  %37 = vrot.lane.b32.xlu1 %v82_v6, %s104_s25 }
   0xe   :  { %43 = vrot.lane.b32.xlu0 %v83_v7, %s105_s30  ;;  %49 = vrot.lane.b32.xlu1 %v84_v8, %s106_s2 }
  0x12   :  { %55 = vrot.lane.b32.xlu0 %v85_v9, %s107_s7  ;;  %61 = vrot.lane.b32.xlu1 %v86_v10, %s108_s8 }
  0x16   :  { %67 = vrot.lane.b32.xlu0 %v87_v11, %s109_s0 }
  0x74   :  { %v8_v12 = vpop.permute.xlu0 %7   ;;  %v20_v13 = vpop.permute.xlu1 %19  }
  0x75   :  { %10 = vst.msk [vmem:[#allocation0] sm:$0x1] %vm9_vm1, %v8_v12  }
  0x78   :  { %v14_v14 = vpop.permute.xlu0 %13   ;;  %v26_v15 = vpop.permute.xlu1 %25  }
  0x79   :  { %16 = vst.msk [vmem:[#allocation0] sm:$0x1] %vm15_vm2, %v14_v14  }
  0x7a   :  { %22 = vst.msk [vmem:[#allocation0] sm:$0x1] %vm21_vm3, %v20_v13  }
  0x7b   :  { %28 = vst.msk [vmem:[#allocation0] sm:$0x1] %vm27_vm4, %v26_v15  }
  0x7c   :  { %v32_v16 = vpop.permute.xlu0 %31   ;;  %v38_v17 = vpop.permute.xlu1 %37  }
  0x7d   :  { %34 = vst.msk [vmem:[#allocation0] sm:$0x1] %vm33_vm5, %v32_v16  }
  0x7e   :  { %40 = vst.msk [vmem:[#allocation0] sm:$0x1] %vm39_vm6, %v38_v17  }
  0x80   :  { %v44_v18 = vpop.permute.xlu0 %43   ;;  %v50_v19 = vpop.permute.xlu1 %49  }
  0x81   :  { %46 = vst.msk [vmem:[#allocation0] sm:$0x1] %vm45_vm7, %v44_v18  }
  0x82   :  { %52 = vst.msk [vmem:[#allocation0] sm:$0x1] %vm51_vm8, %v50_v19  }
  0x84   :  { %v56_v20 = vpop.permute.xlu0 %55   ;;  %v62_v21 = vpop.permute.xlu1 %61  }
  0x85   :  { %58 = vst.msk [vmem:[#allocation0] sm:$0x1] %vm57_vm9, %v56_v20  }
  0x86   :  { %64 = vst.msk [vmem:[#allocation0] sm:$0x1] %vm63_vm10, %v62_v21  }
  0x88   :  { %v68_v22 = vpop.permute.xlu0 %67  }
  0x89   :  { %70 = vst.msk [vmem:[#allocation0] sm:$0x1] %vm69_vm11, %v68_v22  }
  0x90   :  { %v74_v23 = vld [vmem:[#allocation0] sm:$0x1] }
  0x91   :  { %76 = vst [vmem:[%s160_s1] sm:$0x1] %v74_v23 }

// kernel: tile.19
= control target key start
LH: loop header
LB: loop body
LE: loop exit
PB: predicated region body
PF: predicated region fallthrough
CT: control target
= control target key end

     0   :  { %vm7_vm0 = vcmask 130048   ;;  %s37_s8 = smov 16   ;;  %s38_s9 = smov 32   ;;  %vm13_vm1 = vcmask 523648   ;;  %vm19_vm2 = vcmask 392448   ;;  %vm25_vm3 = vcmask 261248   ;;  %s55_s0 = inlined_call_operand.vmem [shape: f32[4,16], index: 0, kind: input, shape index: {}]   ;;  %s56_s1 = inlined_call_operand.vmem [shape: f32[64], index: 1, kind: output, shape index: {}]  }
   0x1   :  { %v4_v0 = vld [vmem:[%s55_s0] sm:$0xf]  ;;  %s36_s0 = smov 48  }
   0x2   :  { %5 = vst [vmem:[#allocation1] sm:$0xf] %v4_v0 }
   0x9   :  { %v10_v1 = vld [vmem:[#allocation1 + $0x3] sm:$0x1]   ;;  %v22_v2 = vld [vmem:[#allocation1 + $0x1] sm:$0x1]   ;;  %v6_v3 = vld [vmem:[#allocation1] sm:$0x1]  }
   0xa   :  { %11 = vrot.lane.b32.xlu0 %v10_v1, %s36_s0  ;;  %23 = vrot.lane.b32.xlu1 %v22_v2, %s37_s8  ;;  %v16_v4 = vld [vmem:[#allocation1 + $0x2] sm:$0x1]   ;;  %8 = vst.msk [vmem:[#allocation0] sm:$0x1] %vm7_vm0, %v6_v3  }
   0xe   :  { %17 = vrot.lane.b32.xlu0 %v16_v4, %s38_s9 }
  0x7c   :  { %v12_v5 = vpop.permute.xlu0 %11   ;;  %v24_v6 = vpop.permute.xlu1 %23  }
  0x7d   :  { %14 = vst.msk [vmem:[#allocation0] sm:$0x1] %vm13_vm1, %v12_v5  }
  0x80   :  { %v18_v7 = vpop.permute.xlu0 %17  }
  0x81   :  { %20 = vst.msk [vmem:[#allocation0] sm:$0x1] %vm19_vm2, %v18_v7  }
  0x82   :  { %26 = vst.msk [vmem:[#allocation0] sm:$0x1] %vm25_vm3, %v24_v6  }
  0x89   :  { %v30_v8 = vld [vmem:[#allocation0] sm:$0x1] }
  0x8a   :  { %32 = vst [vmem:[%s56_s1] sm:$0x1] %v30_v8 }

// kernel: mnist_cnn_forward.1
= control target key start
LH: loop header
LB: loop body
LE: loop exit
PB: predicated region body
PF: predicated region fallthrough
CT: control target
= control target key end

     0   :  { %vm277_vm0 = vcmask 97280   ;;  %vm314_vm1 = vcmask 1045504   ;;  %v2944_v60 = vmov 0   ;;  %vm585_vm2 = vcmask 1043456   ;;  %s3748_s1 = inlined_call_operand.vmem [shape: bf16[140,256], index: 1, kind: input, shape index: {}]   ;;  %s3749_s0 = inlined_call_operand.vmem [shape: bf16[2,12,8,140], index: 0, kind: input, shape index: {}]   ;;  %s3750_s3 = inlined_call_operand.vmem [shape: bf16[5,128,256], index: 3, kind: input, shape index: {}]   ;;  %s3751_s2 = inlined_call_operand.vmem [shape: f32[1,128], index: 2, kind: input, shape index: {}]   ;;  %s3752_s5 = inlined_call_operand.vmem [shape: bf16[4,128,128], index: 5, kind: input, shape index: {}]   ;;  %s3753_s7 = inlined_call_operand.vmem [shape: bf16[128,128], index: 7, kind: input, shape index: {}]   ;;  %s3754_s4 = inlined_call_operand.vmem [shape: f32[1,128], index: 4, kind: input, shape index: {}]   ;;  %s3755_s9 = inlined_call_operand.vmem [shape: bf16[128,128], index: 9, kind: input, shape index: {}]   ;;  %s3756_s6 = inlined_call_operand.vmem [shape: f32[1,128], index: 6, kind: input, shape index: {}]   ;;  %s3757_s8 = inlined_call_operand.vmem [shape: f32[1,128], index: 8, kind: input, shape index: {}]   ;;  %s3758_s10 = inlined_call_operand.vmem [shape: f32[1,128], index: 10, kind: input, shape index: {}]   ;;  %s3759_s11 = inlined_call_operand.vmem [shape: f32[8,128], index: 11, kind: output, shape index: {}]  }
   0x1   :  { %v2713_v0 = vld [vmem:[%s3748_s1 + $0x4] ss:$8 sps:$4 sm:$0xff]   ;;  %v2715_v1 = vld [vmem:[%s3748_s1] ss:$8 sps:$4 sm:$0xff]   ;;  %v2716_v2 = vld [vmem:[%s3748_s1 + $0x14] ss:$8 sps:$4 sm:$0xff]   ;;  %711 = vmatprep.mubr.bf16.mxu1 %v2944_v60 }
   0x2   :  { %321 = vmatprep.subr.bf16.mxu0 %v2713_v0  ;;  %v2718_v3 = vld [vmem:[%s3748_s1 + $0x10] ss:$8 sps:$4 sm:$0xff]   ;;  %v2719_v4 = vld [vmem:[%s3748_s1 + $0x24] ss:$8 sps:$4 sm:$0xff]   ;;  %v2721_v5 = vld [vmem:[%s3748_s1 + $0x20] ss:$8 sps:$4 sm:$0xff]  }
   0x3   :  { %322 = vmatpush1.bf16.msra.mxu0 %v2715_v1  ;;  %v2722_v6 = vld [vmem:[%s3748_s1 + $0x34] ss:$8 sps:$4 sm:$0xff]   ;;  %v2724_v7 = vld [vmem:[%s3748_s1 + $0x30] ss:$8 sps:$4 sm:$0xff]   ;;  %v2725_v8 = vld [vmem:[%s3748_s1 + $0x44] ss:$8 sps:$4 sm:$0xff]  }
   0x4   :  { %323 = vmatprep.subr.bf16.mxu0 %v2716_v2  ;;  %v2742_v9 = vld [vmem:[%s3749_s0 + $0x4] ss:$8 sps:$4 sm:$0xff]   ;;  %v2727_v10 = vld [vmem:[%s3748_s1 + $0x40] ss:$8 sps:$4 sm:$0xff]   ;;  %v2728_v11 = vld [vmem:[%s3748_s1 + $0x54] ss:$8 sps:$4 sm:$0xff]  }
   0x5   :  { %2202 = vmatprep.mubr.msk.bf16.mxu0 %vm277_vm0, %v2742_v9  ;;  %v2730_v12 = vld [vmem:[%s3748_s1 + $0x50] ss:$8 sps:$4 sm:$0xff]   ;;  %v2731_v13 = vld [vmem:[%s3748_s1 + $0x64] ss:$8 sps:$4 sm:$0xff]   ;;  %v2733_v14 = vld [vmem:[%s3748_s1 + $0x60] ss:$8 sps:$4 sm:$0xff]  }
   0x6   :  { %v2734_v15 = vld [vmem:[%s3748_s1 + $0x74] ss:$8 sps:$4 sm:$0xff]   ;;  %v2736_v16 = vld [vmem:[%s3748_s1 + $0x70] ss:$8 sps:$4 sm:$0xff]   ;;  %v2740_v20 = vld [vmem:[%s3749_s0] ss:$8 sps:$4 sm:$0xff]  }
   0x7   :  { %324 = vmatpush1.bf16.msra.mxu0 %v2718_v3  ;;  %v2737_v17 = vld [vmem:[%s3748_s1 + $0x84] ss:$8 sps:$4 sm:$0x3f]   ;;  %v2739_v18 = vld [vmem:[%s3748_s1 + $0x80] ss:$8 sps:$4 sm:$0x3f]  }
   0x8   :  { %325 = vmatprep.subr.bf16.mxu0 %v2719_v4  ;;  %v316_v19 = vsel %vm314_vm1, %v2739_v18, 0  ;;  %v2743_v21 = vld [vmem:[%s3749_s0 + $0x14] ss:$8 sps:$4 sm:$0xff]   ;;  %v2745_v22 = vld [vmem:[%s3749_s0 + $0x10] ss:$8 sps:$4 sm:$0xff]   ;;  %vm2946_vm3 = vmmov 0  }
   0x9   :  { %v2746_v23 = vld [vmem:[%s3749_s0 + $0x24] ss:$8 sps:$4 sm:$0xff]   ;;  %v2748_v24 = vld [vmem:[%s3749_s0 + $0x20] ss:$8 sps:$4 sm:$0xff]   ;;  %v2749_v25 = vld [vmem:[%s3749_s0 + $0x34] ss:$8 sps:$4 sm:$0xff]  }
   0xa   :  { %v2751_v26 = vld [vmem:[%s3749_s0 + $0x30] ss:$8 sps:$4 sm:$0xff]   ;;  %v2752_v27 = vld [vmem:[%s3749_s0 + $0x44] ss:$8 sps:$4 sm:$0xff]   ;;  %v2754_v28 = vld [vmem:[%s3749_s0 + $0x40] ss:$8 sps:$4 sm:$0xff]  }
   0xb   :  { %326 = vmatpush1.bf16.msra.mxu0 %v2721_v5  ;;  %v2755_v29 = vld [vmem:[%s3749_s0 + $0x54] ss:$8 sps:$4 sm:$0xff]   ;;  %v2757_v30 = vld [vmem:[%s3749_s0 + $0x50] ss:$8 sps:$4 sm:$0xff]   ;;  %v2758_v31 = vld [vmem:[%s3749_s0 + $0x64] ss:$8 sps:$4 sm:$0xff]  }
   0xc   :  { %327 = vmatprep.subr.bf16.mxu0 %v2722_v6  ;;  %v2760_v32 = vld [vmem:[%s3749_s0 + $0x60] ss:$8 sps:$4 sm:$0xff]   ;;  %v2761_v33 = vld [vmem:[%s3749_s0 + $0x74] ss:$8 sps:$4 sm:$0xff]   ;;  %v2763_v34 = vld [vmem:[%s3749_s0 + $0x70] ss:$8 sps:$4 sm:$0xff]  }
   0xd   :  { %v2764_v35 = vld [vmem:[%s3749_s0 + $0x84] ss:$8 sps:$4 sm:$0xff]   ;;  %v2766_v36 = vld [vmem:[%s3749_s0 + $0x80] ss:$8 sps:$4 sm:$0xff]   ;;  %v2767_v37 = vld [vmem:[%s3749_s0 + $0x94] ss:$8 sps:$4 sm:$0xff]  }
   0xe   :  { %v2769_v38 = vld [vmem:[%s3749_s0 + $0x90] ss:$8 sps:$4 sm:$0xff]   ;;  %v2770_v39 = vld [vmem:[%s3749_s0 + $0xa4] ss:$8 sps:$4 sm:$0xff]   ;;  %v2772_v40 = vld [vmem:[%s3749_s0 + $0xa0] ss:$8 sps:$4 sm:$0xff]  }
   0xf   :  { %328 = vmatpush1.bf16.msra.mxu0 %v2724_v7  ;;  %v2773_v41 = vld [vmem:[%s3749_s0 + $0xb4] ss:$8 sps:$4 sm:$0xff]   ;;  %v2775_v42 = vld [vmem:[%s3749_s0 + $0xb0] ss:$8 sps:$4 sm:$0xff]   ;;  %v2776_v43 = vld [vmem:[%s3750_s3 + $0x84] ss:$8 sps:$4 sm:$0xff]  }
  0x10   :  { %329 = vmatprep.subr.bf16.mxu0 %v2725_v8  ;;  %v2778_v44 = vld [vmem:[%s3750_s3 + $0x80] ss:$8 sps:$4 sm:$0xff]   ;;  %679 = vmatprep.subr.bf16.mxu1 %v2776_v43  ;;  %v2779_v45 = vld [vmem:[%s3750_s3 + $0x94] ss:$8 sps:$4 sm:$0xff]   ;;  %v2781_v46 = vld [vmem:[%s3750_s3 + $0x90] ss:$8 sps:$4 sm:$0xff]  }
  0x11   :  { %680 = vmatpush1.bf16.msra.mxu1 %v2778_v44  ;;  %v2782_v47 = vld [vmem:[%s3750_s3 + $0xa4] ss:$8 sps:$4 sm:$0xff]   ;;  %v2784_v48 = vld [vmem:[%s3750_s3 + $0xa0] ss:$8 sps:$4 sm:$0xff]   ;;  %v2785_v49 = vld [vmem:[%s3750_s3 + $0xb4] ss:$8 sps:$4 sm:$0xff]  }
  0x12   :  { %681 = vmatprep.subr.bf16.mxu1 %v2779_v45  ;;  %v2787_v50 = vld [vmem:[%s3750_s3 + $0xb0] ss:$8 sps:$4 sm:$0xff]   ;;  %v2788_v51 = vld [vmem:[%s3750_s3 + $0xc4] ss:$8 sps:$4 sm:$0xff]   ;;  %v2790_v52 = vld [vmem:[%s3750_s3 + $0xc0] ss:$8 sps:$4 sm:$0xff]  }
  0x13   :  { %330 = vmatpush1.bf16.msra.mxu0 %v2727_v10  ;;  %v2791_v53 = vld [vmem:[%s3750_s3 + $0xd4] ss:$8 sps:$4 sm:$0xff]   ;;  %v2793_v54 = vld [vmem:[%s3750_s3 + $0xd0] ss:$8 sps:$4 sm:$0xff]   ;;  %v2794_v55 = vld [vmem:[%s3750_s3 + $0xe4] ss:$8 sps:$4 sm:$0xff]  }
  0x14   :  { %331 = vmatprep.subr.bf16.mxu0 %v2728_v11  ;;  %v2796_v56 = vld [vmem:[%s3750_s3 + $0xe0] ss:$8 sps:$4 sm:$0xff]   ;;  %v2797_v57 = vld [vmem:[%s3750_s3 + $0xf4] ss:$8 sps:$4 sm:$0xff]   ;;  %v2799_v58 = vld [vmem:[%s3750_s3 + $0xf0] ss:$8 sps:$4 sm:$0xff]  }
  0x15   :  { %682 = vmatpush1.bf16.msra.mxu1 %v2781_v46  ;;  %v2802_v59 = vld [vmem:[%s3750_s3 + $0x4] ss:$8 sps:$4 sm:$0xff]  }
  0x16   :  { %683 = vmatprep.subr.bf16.mxu1 %v2782_v47 }
  0x17   :  { %332 = vmatpush1.bf16.msra.mxu0 %v2730_v12 }
  0x18   :  { %333 = vmatprep.subr.bf16.mxu0 %v2731_v13 }
  0x19   :  { %684 = vmatpush1.bf16.msra.mxu1 %v2784_v48 }
  0x1a   :  { %685 = vmatprep.subr.bf16.mxu1 %v2785_v49 }
  0x1b   :  { %334 = vmatpush1.bf16.msra.mxu0 %v2733_v14 }
  0x1c   :  { %335 = vmatprep.subr.bf16.mxu0 %v2734_v15 }
  0x1d   :  { %686 = vmatpush1.bf16.msra.mxu1 %v2787_v50 }
  0x1e   :  { %687 = vmatprep.subr.bf16.mxu1 %v2788_v51 }
  0x1f   :  { %336 = vmatpush1.bf16.msra.mxu0 %v2736_v16 }
  0x20   :  { %2201 = vmatprep.subr.msk.bf16.mxu0 %vm314_vm1, %v2737_v17 }
  0x21   :  { %688 = vmatpush1.bf16.msra.mxu1 %v2790_v52 }
  0x22   :  { %689 = vmatprep.subr.bf16.mxu1 %v2791_v53 }
  0x23   :  { %338 = vmatpush1.bf16.msra.mxu0 %v316_v19 }
  0x25   :  { %690 = vmatpush1.bf16.msra.mxu1 %v2793_v54 }
  0x26   :  { %354 = vmatmul.mubr.bf16.vlgmr.msra.gmra.mrb[0].mxu0 %v2740_v20  ;;  %691 = vmatprep.subr.bf16.mxu1 %v2794_v55 }
  0x27   :  { %2203 = vmatprep.mubr.msk.bf16.mxu0 %vm277_vm0, %v2743_v21 }
  0x29   :  { %692 = vmatpush1.bf16.msra.mxu1 %v2796_v56 }
  0x2a   :  { %693 = vmatprep.subr.bf16.mxu1 %v2797_v57 }
  0x2d   :  { %694 = vmatpush1.bf16.msra.mxu1 %v2799_v58 }
  0x2e   :  { %364 = vmatmul.mubr.bf16.gmra.mrb[4].mxu0 %v2745_v22  ;;  %832 = vmatprep.subr.bf16.mxu1 %v2802_v59 }
  0x2f   :  { %2204 = vmatprep.mubr.msk.bf16.mxu0 %vm277_vm0, %v2746_v23 }
  0x36   :  { %374 = vmatmul.mubr.bf16.gmra.mrb[8].mxu0 %v2748_v24 }
  0x37   :  { %2205 = vmatprep.mubr.msk.bf16.mxu0 %vm277_vm0, %v2749_v25 }
  0x3e   :  { %384 = vmatmul.mubr.bf16.gmra.mrb[12].mxu0 %v2751_v26 }
  0x3f   :  { %2206 = vmatprep.mubr.msk.bf16.mxu0 %vm277_vm0, %v2752_v27 }
  0x46   :  { %394 = vmatmul.mubr.bf16.gmra.mrb[16].mxu0 %v2754_v28 }
  0x47   :  { %2207 = vmatprep.mubr.msk.bf16.mxu0 %vm277_vm0, %v2755_v29 }
  0x4e   :  { %404 = vmatmul.mubr.bf16.gmra.mrb[20].mxu0 %v2757_v30 }
  0x4f   :  { %2208 = vmatprep.mubr.msk.bf16.mxu0 %vm277_vm0, %v2758_v31 }
  0x56   :  { %414 = vmatmul.mubr.bf16.gmra.mrb[24].mxu0 %v2760_v32 }
  0x57   :  { %2209 = vmatprep.mubr.msk.bf16.mxu0 %vm277_vm0, %v2761_v33 }
  0x5e   :  { %424 = vmatmul.mubr.bf16.gmra.mrb[28].mxu0 %v2763_v34 }
  0x5f   :  { %2210 = vmatprep.mubr.msk.bf16.mxu0 %vm277_vm0, %v2764_v35 }
  0x66   :  { %434 = vmatmul.mubr.bf16.gmra.mrb[32].mxu0 %v2766_v36 }
  0x67   :  { %2211 = vmatprep.mubr.msk.bf16.mxu0 %vm277_vm0, %v2767_v37  ;;  %v3236_v37 = vld [vmem:[%s3751_s2] ss:$0 sm:$0xff] }
  0x6e   :  { %444 = vmatmul.mubr.bf16.gmra.mrb[36].mxu0 %v2769_v38 }
  0x6f   :  { %2212 = vmatprep.mubr.msk.bf16.mxu0 %vm277_vm0, %v2770_v39 }
  0x76   :  { %454 = vmatmul.mubr.bf16.gmra.mrb[40].mxu0 %v2772_v40 }
  0x77   :  { %2213 = vmatprep.mubr.msk.bf16.mxu0 %vm277_vm0, %v2773_v41 }
  0x7e   :  { %464 = vmatmul.mubr.bf16.gmra.mrb[44].mxu0 %v2775_v42 }
  0xf9   :  { %v355_v61 = vpop.f32.mrb[0].mxu0 }
  0xfa   :  { %v357_v62 = vpop.f32.mrb[1].mxu0 }
  0xfb   :  { %v474_v63 = vmax.f32 %v355_v61, %v357_v62  ;;  %v359_v0 = vpop.f32.mrb[2].mxu0 }
  0xfc   :  { %v361_v1 = vpop.f32.mrb[3].mxu0 }
  0xfd   :  { %v475_v2 = vmax.f32 %v359_v0, %v361_v1 }
 0x101   :  { %v365_v3 = vpop.f32.mrb[4].mxu0 }
 0x102   :  { %v367_v4 = vpop.f32.mrb[5].mxu0 }
 0x103   :  { %v476_v5 = vmax.f32 %v365_v3, %v367_v4  ;;  %v369_v6 = vpop.f32.mrb[6].mxu0 }
 0x104   :  { %v371_v7 = vpop.f32.mrb[7].mxu0 }
 0x105   :  { %v477_v8 = vmax.f32 %v369_v6, %v371_v7  ;;  %v2800_v6 = vld [vmem:[%s3750_s3] ss:$8 sps:$4 sm:$0xff]  }
 0x109   :  { %v375_v9 = vpop.f32.mrb[8].mxu0 }
 0x10a   :  { %v377_v10 = vpop.f32.mrb[9].mxu0 }
 0x10b   :  { %v478_v11 = vmax.f32 %v375_v9, %v377_v10  ;;  %v379_v12 = vpop.f32.mrb[10].mxu0  ;;  %v2805_v9 = vld [vmem:[%s3750_s3 + $0x14] ss:$8 sps:$4 sm:$0xff]  }
 0x10c   :  { %v381_v13 = vpop.f32.mrb[11].mxu0 }
 0x10d   :  { %v479_v14 = vmax.f32 %v379_v12, %v381_v13 }
 0x111   :  { %v3197_v15 = vpop.f32.mrb[12].mxu0 }
 0x112   :  { %v3199_v16 = vpop.f32.mrb[13].mxu0 }
 0x113   :  { %v480_v17 = vmax.f32 %v3197_v15, %v3199_v16  ;;  %v3203_v18 = vpop.f32.mrb[14].mxu0  ;;  %v2811_v15 = vld [vmem:[%s3750_s3 + $0x34] ss:$8 sps:$4 sm:$0xff]  }
 0x114   :  { %v3205_v19 = vpop.f32.mrb[15].mxu0 }
 0x115   :  { %v481_v20 = vmax.f32 %v3203_v18, %v3205_v19 }
 0x119   :  { %v3209_v21 = vpop.f32.mrb[16].mxu0 }
 0x11a   :  { %v3211_v22 = vpop.f32.mrb[17].mxu0 }
 0x11b   :  { %v482_v23 = vmax.f32 %v3209_v21, %v3211_v22  ;;  %v3215_v24 = vpop.f32.mrb[18].mxu0  ;;  %v2817_v21 = vld [vmem:[%s3750_s3 + $0x54] ss:$8 sps:$4 sm:$0xff]  }
 0x11c   :  { %v3217_v25 = vpop.f32.mrb[19].mxu0 }
 0x11d   :  { %v483_v26 = vmax.f32 %v3215_v24, %v3217_v25 }
 0x121   :  { %v3221_v27 = vpop.f32.mrb[20].mxu0 }
 0x122   :  { %v3223_v28 = vpop.f32.mrb[21].mxu0 }
 0x123   :  { %v484_v29 = vmax.f32 %v3221_v27, %v3223_v28  ;;  %v3227_v30 = vpop.f32.mrb[22].mxu0  ;;  %v2823_v27 = vld [vmem:[%s3750_s3 + $0x74] ss:$8 sps:$4 sm:$0xff]  }
 0x124   :  { %v3229_v31 = vpop.f32.mrb[23].mxu0 }
 0x125   :  { %v485_v32 = vmax.f32 %v3227_v30, %v3229_v31  ;;  %v2821_v30 = vld [vmem:[%s3750_s3 + $0x70] ss:$8 sps:$4 sm:$0xff]  }
 0x129   :  { %v415_v33 = vpop.f32.mrb[24].mxu0 }
 0x12a   :  { %v417_v34 = vpop.f32.mrb[25].mxu0 }
 0x12b   :  { %v486_v35 = vmax.f32 %v415_v33, %v417_v34  ;;  %v419_v36 = vpop.f32.mrb[26].mxu0 }
 0x12c   :  { %v421_v38 = vpop.f32.mrb[27].mxu0 }
 0x12d   :  { %v498_v39 = vmax.f32 %v474_v63, %v486_v35  ;;  %v487_v40 = vmax.f32 %v419_v36, %v421_v38  ;;  %v2803_v36 = vld [vmem:[%s3750_s3 + $0x10] ss:$8 sps:$4 sm:$0xff]  }
 0x12f   :  { %v517_v41 = vadd.f32 %v3236_v37, %v498_v39  ;;  %v499_v42 = vmax.f32 %v475_v2, %v487_v40  ;;  %v2808_v39 = vld [vmem:[%s3750_s3 + $0x24] ss:$8 sps:$4 sm:$0xff]  }
 0x131   :  { %v518_v43 = vadd.f32 %v3236_v37, %v499_v42  ;;  %v425_v44 = vpop.f32.mrb[28].mxu0  ;;  %v529_v46 = vmax.f32 %v517_v41, 0.0 }
 0x132   :  { %v427_v45 = vpop.f32.mrb[29].mxu0 }
 0x133   :  { %v530_v47 = vmax.f32 %v518_v43, 0.0  ;;  %v488_v48 = vmax.f32 %v425_v44, %v427_v45  ;;  %v429_v49 = vpop.f32.mrb[30].mxu0  ;;  %v2806_v45 = vld [vmem:[%s3750_s3 + $0x20] ss:$8 sps:$4 sm:$0xff]  }
 0x134   :  { %v431_v50 = vpop.f32.mrb[31].mxu0 }
 0x135   :  { %v3240_v51 = vpack.c.bf16 %v530_v47, %v529_v46  ;;  %v500_v52 = vmax.f32 %v476_v5, %v488_v48  ;;  %v489_v53 = vmax.f32 %v429_v49, %v431_v50  ;;  %v2809_v50 = vld [vmem:[%s3750_s3 + $0x30] ss:$8 sps:$4 sm:$0xff]  }
 0x137   :  { %v519_v54 = vadd.f32 %v3236_v37, %v500_v52  ;;  %v501_v55 = vmax.f32 %v477_v8, %v489_v53  ;;  %v586_v7 = vrot.slane %v3240_v51, 4  ;;  %v2814_v53 = vld [vmem:[%s3750_s3 + $0x44] ss:$8 sps:$4 sm:$0xff]  }
 0x139   :  { %v520_v56 = vadd.f32 %v3236_v37, %v501_v55  ;;  %v435_v57 = vpop.f32.mrb[32].mxu0  ;;  %v531_v59 = vmax.f32 %v519_v54, 0.0 }
 0x13a   :  { %v437_v58 = vpop.f32.mrb[33].mxu0 }
 0x13b   :  { %v532_v61 = vmax.f32 %v520_v56, 0.0  ;;  %v490_v62 = vmax.f32 %v435_v57, %v437_v58  ;;  %v439_v63 = vpop.f32.mrb[34].mxu0 }
 0x13c   :  { %v441_v0 = vpop.f32.mrb[35].mxu0 }
 0x13d   :  { %v3244_v1 = vpack.c.bf16 %v532_v61, %v531_v59  ;;  %v502_v2 = vmax.f32 %v478_v11, %v490_v62  ;;  %v491_v3 = vmax.f32 %v439_v63, %v441_v0  ;;  %v2812_v59 = vld [vmem:[%s3750_s3 + $0x40] ss:$8 sps:$4 sm:$0xff]  }
 0x13f   :  { %v521_v4 = vadd.f32 %v3236_v37, %v502_v2  ;;  %v503_v5 = vmax.f32 %v479_v14, %v491_v3  ;;  %v587_v8 = vrot.slane %v3244_v1, 4  ;;  %v2815_v2 = vld [vmem:[%s3750_s3 + $0x50] ss:$8 sps:$4 sm:$0xff]  }
 0x141   :  { %v522_v10 = vadd.f32 %v3236_v37, %v503_v5  ;;  %v445_v11 = vpop.f32.mrb[36].mxu0  ;;  %v588_v12 = vsel %vm585_vm2, %v586_v7, %v587_v8  ;;  %v533_v14 = vmax.f32 %v521_v4, 0.0  ;;  %v2820_v4 = vld [vmem:[%s3750_s3 + $0x64] ss:$8 sps:$4 sm:$0xff]  }
 0x142   :  { %v447_v13 = vpop.f32.mrb[37].mxu0  ;;  %712 = vmatmul.mubr.bf16.vlgmr.msra.gmra.mrb[0].mxu1 %v588_v12 }
 0x143   :  { %v534_v33 = vmax.f32 %v522_v10, 0.0  ;;  %v492_v34 = vmax.f32 %v445_v11, %v447_v13  ;;  %833 = vmatpush1.bf16.msra.mxu1 %v2800_v6  ;;  %v449_v35 = vpop.f32.mrb[38].mxu0  ;;  %721 = vmatprep.mubr.bf16.mxu1 %v2944_v60  ;;  %v2818_v10 = vld [vmem:[%s3750_s3 + $0x60] ss:$8 sps:$4 sm:$0xff]   ;;  %v2945_v13 = vmov 0.0  }
 0x144   :  { %v451_v38 = vpop.f32.mrb[39].mxu0  ;;  %834 = vmatprep.subr.bf16.mxu1 %v2805_v9  ;;  %2513 = vmatprep.subr.bf16.mxu0 %v2945_v13 }
 0x145   :  { %v3264_v40 = vpack.c.bf16 %v534_v33, %v533_v14  ;;  %v504_v41 = vmax.f32 %v480_v17, %v492_v34  ;;  %v493_v42 = vmax.f32 %v449_v35, %v451_v38  ;;  %v2897_v33 = vld [vmem:[%s3752_s5 + $0x8] sm:$0xff]   ;;  %v2827_v38 = vld [vmem:[%s3750_s3 + $0x110] ss:$8 sps:$4 sm:$0xff]   ;;  %2529 = vmatprep.mubr.msk.bf16.mxu0 %vm2946_vm3, %v2945_v13 }
 0x146   :  { %v2824_v34 = vld [vmem:[%s3750_s3 + $0x100] ss:$8 sps:$4 sm:$0xff]  }
 0x147   :  { %v523_v43 = vadd.f32 %v3236_v37, %v504_v41  ;;  %v505_v44 = vmax.f32 %v481_v20, %v493_v42  ;;  %835 = vmatpush1.bf16.msra.mxu1 %v2803_v36  ;;  %v589_v46 = vrot.slane %v3264_v40, 4  ;;  %v2829_v36 = vld [vmem:[%s3750_s3 + $0x114] ss:$8 sps:$4 sm:$0xff]   ;;  %v2832_v42 = vld [vmem:[%s3750_s3 + $0x124] ss:$8 sps:$4 sm:$0xff]  }
 0x148   :  { %836 = vmatprep.subr.bf16.mxu1 %v2808_v39  ;;  %v2898_v41 = vld [vmem:[%s3752_s5 + $0x10] sm:$0xff]  }
 0x149   :  { %v524_v16 = vadd.f32 %v3236_v37, %v505_v44  ;;  %v455_v17 = vpop.f32.mrb[40].mxu0  ;;  %v3282_v47 = vsel %vm585_vm2, %v587_v8, %v589_v46  ;;  %v535_v19 = vmax.f32 %v523_v43, 0.0  ;;  %v2899_v43 = vld [vmem:[%s3752_s5 + $0x18] sm:$0xff]   ;;  %v2830_v44 = vld [vmem:[%s3750_s3 + $0x120] ss:$8 sps:$4 sm:$0xff]  }
 0x14a   :  { %v457_v18 = vpop.f32.mrb[41].mxu0  ;;  %722 = vmatmul.mubr.bf16.gmra.mrb[4].mxu1 %v3282_v47 }
 0x14b   :  { %v536_v20 = vmax.f32 %v524_v16, 0.0  ;;  %v494_v48 = vmax.f32 %v455_v17, %v457_v18  ;;  %837 = vmatpush1.bf16.msra.mxu1 %v2806_v45  ;;  %v459_v49 = vpop.f32.mrb[42].mxu0  ;;  %731 = vmatprep.mubr.bf16.mxu1 %v2944_v60  ;;  %v2900_v45 = vld [vmem:[%s3752_s5 + $0x20] sm:$0xff]   ;;  %v2901_v16 = vld [vmem:[%s3752_s5 + $0x28] sm:$0xff]   ;;  %v2841_v18 = vld [vmem:[%s3750_s3 + $0x154] ss:$8 sps:$4 sm:$0xff]  }
 0x14c   :  { %v461_v52 = vpop.f32.mrb[43].mxu0  ;;  %838 = vmatprep.subr.bf16.mxu1 %v2811_v15  ;;  %v2838_v15 = vld [vmem:[%s3750_s3 + $0x144] ss:$8 sps:$4 sm:$0xff]   ;;  %v2836_v17 = vld [vmem:[%s3750_s3 + $0x140] ss:$8 sps:$4 sm:$0xff]  }
 0x14d   :  { %v3292_v54 = vpack.c.bf16 %v536_v20, %v535_v19  ;;  %v506_v55 = vmax.f32 %v482_v23, %v494_v48  ;;  %v495_v56 = vmax.f32 %v459_v49, %v461_v52  ;;  %v2902_v19 = vld [vmem:[%s3752_s5 + $0x30] sm:$0xff]   ;;  %v2844_v48 = vld [vmem:[%s3750_s3 + $0x164] ss:$8 sps:$4 sm:$0xff]   ;;  %v2842_v49 = vld [vmem:[%s3750_s3 + $0x160] ss:$8 sps:$4 sm:$0xff]  }
 0x14e   :  { %v2839_v20 = vld [vmem:[%s3750_s3 + $0x150] ss:$8 sps:$4 sm:$0xff]  }
 0x14f   :  { %v525_v57 = vadd.f32 %v3236_v37, %v506_v55  ;;  %v507_v58 = vmax.f32 %v483_v26, %v495_v56  ;;  %839 = vmatpush1.bf16.msra.mxu1 %v2809_v50  ;;  %v591_v61 = vrot.slane %v3292_v54, 4  ;;  %v2847_v50 = vld [vmem:[%s3750_s3 + $0x174] ss:$8 sps:$4 sm:$0xff]   ;;  %v2845_v52 = vld [vmem:[%s3750_s3 + $0x170] ss:$8 sps:$4 sm:$0xff]  }
 0x150   :  { %840 = vmatprep.subr.bf16.mxu1 %v2814_v53  ;;  %v2850_v53 = vld [vmem:[%s3750_s3 + $0x184] ss:$8 sps:$4 sm:$0xff]   ;;  %v2848_v55 = vld [vmem:[%s3750_s3 + $0x180] ss:$8 sps:$4 sm:$0xff]   ;;  %v2853_v56 = vld [vmem:[%s3750_s3 + $0x194] ss:$8 sps:$4 sm:$0xff]  }
 0x151   :  { %v526_v22 = vadd.f32 %v3236_v37, %v507_v58  ;;  %v465_v23 = vpop.f32.mrb[44].mxu0  ;;  %v3310_v62 = vsel %vm585_vm2, %v589_v46, %v591_v61  ;;  %v537_v25 = vmax.f32 %v525_v57, 0.0  ;;  %v2833_v46 = vld [vmem:[%s3750_s3 + $0x130] ss:$8 sps:$4 sm:$0xff]   ;;  %v2856_v58 = vld [vmem:[%s3750_s3 + $0x1a4] ss:$8 sps:$4 sm:$0xff]  }
 0x152   :  { %v467_v24 = vpop.f32.mrb[45].mxu0  ;;  %732 = vmatmul.mubr.bf16.gmra.mrb[8].mxu1 %v3310_v62  ;;  %v2851_v57 = vld [vmem:[%s3750_s3 + $0x190] ss:$8 sps:$4 sm:$0xff]  }
 0x153   :  { %v538_v26 = vmax.f32 %v526_v22, 0.0  ;;  %v496_v63 = vmax.f32 %v465_v23, %v467_v24  ;;  %841 = vmatpush1.bf16.msra.mxu1 %v2812_v59  ;;  %v469_v0 = vpop.f32.mrb[46].mxu0  ;;  %741 = vmatprep.mubr.bf16.mxu1 %v2944_v60  ;;  %v2854_v59 = vld [vmem:[%s3750_s3 + $0x1a0] ss:$8 sps:$4 sm:$0xff]   ;;  %v2865_v23 = vld [vmem:[%s3750_s3 + $0x1d4] ss:$8 sps:$4 sm:$0xff]  }
 0x154   :  { %v471_v3 = vpop.f32.mrb[47].mxu0  ;;  %842 = vmatprep.subr.bf16.mxu1 %v2817_v21  ;;  %v2862_v21 = vld [vmem:[%s3750_s3 + $0x1c4] ss:$8 sps:$4 sm:$0xff]   ;;  %v2860_v22 = vld [vmem:[%s3750_s3 + $0x1c0] ss:$8 sps:$4 sm:$0xff]  }
 0x155   :  { %v3320_v5 = vpack.c.bf16 %v538_v26, %v537_v25  ;;  %v508_v6 = vmax.f32 %v484_v29, %v496_v63  ;;  %v497_v7 = vmax.f32 %v469_v0, %v471_v3  ;;  %v2863_v24 = vld [vmem:[%s3750_s3 + $0x1d0] ss:$8 sps:$4 sm:$0xff]   ;;  %v2868_v25 = vld [vmem:[%s3750_s3 + $0x1e4] ss:$8 sps:$4 sm:$0xff]   ;;  %v2866_v26 = vld [vmem:[%s3750_s3 + $0x1e0] ss:$8 sps:$4 sm:$0xff]  }
 0x156   :  { %v2871_v63 = vld [vmem:[%s3750_s3 + $0x1f4] ss:$8 sps:$4 sm:$0xff]   ;;  %v2869_v0 = vld [vmem:[%s3750_s3 + $0x1f0] ss:$8 sps:$4 sm:$0xff]   ;;  %v2872_v3 = vld [vmem:[%s3750_s3 + $0x200] ss:$8 sps:$4 sm:$0xff]  }
 0x157   :  { %v527_v8 = vadd.f32 %v3236_v37, %v508_v6  ;;  %v509_v9 = vmax.f32 %v485_v32, %v497_v7  ;;  %843 = vmatpush1.bf16.msra.mxu1 %v2815_v2  ;;  %v593_v11 = vrot.slane %v3320_v5, 4  ;;  %v2896_v32 = vld [vmem:[%s3752_s5] sm:$0xff]   ;;  %v2875_v6 = vld [vmem:[%s3750_s3 + $0x210] ss:$8 sps:$4 sm:$0xff]  }
 0x158   :  { %844 = vmatprep.subr.bf16.mxu1 %v2820_v4  ;;  %2514 = vmatpush3.bf16.msra.mxu0 %v2896_v32  ;;  %v2874_v2 = vld [vmem:[%s3750_s3 + $0x204] ss:$8 sps:$4 sm:$0xff]   ;;  %v2877_v4 = vld [vmem:[%s3750_s3 + $0x214] ss:$8 sps:$4 sm:$0xff]  }
 0x159   :  { %v528_v28 = vadd.f32 %v3236_v37, %v509_v9  ;;  %v3338_v29 = vsel %vm585_vm2, %v591_v61, %v593_v11  ;;  %v539_v12 = vmax.f32 %v527_v8, 0.0  ;;  %v2826_v37 = vld [vmem:[%s3750_s3 + $0x104] ss:$8 sps:$4 sm:$0xff]   ;;  %2515 = vmatprep.subr.bf16.mxu0 %v2945_v13  ;;  %v2857_v61 = vld [vmem:[%s3750_s3 + $0x1b0] ss:$8 sps:$4 sm:$0xff]  }
 0x15a   :  { %742 = vmatmul.mubr.bf16.gmra.mrb[12].mxu1 %v3338_v29  ;;  %v2880_v7 = vld [vmem:[%s3750_s3 + $0x224] ss:$8 sps:$4 sm:$0xff]   ;;  %v2878_v8 = vld [vmem:[%s3750_s3 + $0x220] ss:$8 sps:$4 sm:$0xff]   ;;  %v2881_v9 = vld [vmem:[%s3750_s3 + $0x230] ss:$8 sps:$4 sm:$0xff]  }
 0x15b   :  { %v540_v31 = vmax.f32 %v528_v28, 0.0  ;;  %845 = vmatpush1.bf16.msra.mxu1 %v2818_v10  ;;  %864 = vmatprep.mubr.bf16.mxu1 %v2944_v60  ;;  %v2886_v10 = vld [vmem:[%s3750_s3 + $0x244] ss:$8 sps:$4 sm:$0xff]  }
 0x15c   :  { %846 = vmatprep.subr.bf16.mxu1 %v2823_v27  ;;  %2516 = vmatpush3.bf16.msra.mxu0 %v2897_v33  ;;  %v2887_v27 = vld [vmem:[%s3750_s3 + $0x250] ss:$8 sps:$4 sm:$0xff]   ;;  %v2892_v28 = vld [vmem:[%s3750_s3 + $0x264] ss:$8 sps:$4 sm:$0xff]  }
 0x15d   :  { %v3352_v14 = vpack.c.bf16 %v540_v31, %v539_v12  ;;  %2517 = vmatprep.subr.bf16.mxu0 %v2945_v13  ;;  %v2890_v12 = vld [vmem:[%s3750_s3 + $0x260] ss:$8 sps:$4 sm:$0xff]   ;;  %v2903_v31 = vld [vmem:[%s3752_s5 + $0x38] sm:$0xff]  }
 0x15e   :  { %v2932_v32 = vld [vmem:[%s3753_s7 + $0x20] sm:$0xff]   ;;  %v2933_v33 = vld [vmem:[%s3753_s7 + $0x28] sm:$0xff]  }
 0x15f   :  { %847 = vmatpush1.bf16.msra.mxu1 %v2821_v30  ;;  %v1109_v35 = vrot.slane %v3352_v14, 4  ;;  %v2893_v30 = vld [vmem:[%s3750_s3 + $0x270] ss:$8 sps:$4 sm:$0xff]  }
 0x160   :  { %1002 = vmatprep.subr.bf16.mxu1 %v2826_v37  ;;  %2518 = vmatpush3.bf16.msra.mxu0 %v2898_v41  ;;  %v2934_v41 = vld [vmem:[%s3753_s7 + $0x30] sm:$0xff]  }
 0x161   :  { %v3369_v39 = vsel %vm585_vm2, %v593_v11, %v1109_v35  ;;  %2519 = vmatprep.subr.bf16.mxu0 %v2945_v13  ;;  %v2884_v11 = vld [vmem:[%s3750_s3 + $0x240] ss:$8 sps:$4 sm:$0xff]  }
 0x162   :  { %865 = vmatmul.mubr.bf16.vlgmr.msra.gmra.mrb[0].mxu1 %v3240_v51  ;;  %v2835_v51 = vld [vmem:[%s3750_s3 + $0x134] ss:$8 sps:$4 sm:$0xff]  }
 0x163   :  { %1003 = vmatpush1.bf16.msra.mxu1 %v2824_v34  ;;  %874 = vmatprep.mubr.bf16.mxu1 %v2944_v60 }
 0x164   :  { %1004 = vmatprep.subr.bf16.mxu1 %v2829_v36  ;;  %2520 = vmatpush3.bf16.msra.mxu0 %v2899_v43 }
 0x165   :  { %2521 = vmatprep.subr.bf16.mxu0 %v2945_v13 }
 0x167   :  { %1005 = vmatpush1.bf16.msra.mxu1 %v2827_v38 }
 0x168   :  { %1006 = vmatprep.subr.bf16.mxu1 %v2832_v42  ;;  %2522 = vmatpush3.bf16.msra.mxu0 %v2900_v45 }
 0x169   :  { %2523 = vmatprep.subr.bf16.mxu0 %v2945_v13 }
 0x16a   :  { %875 = vmatmul.mubr.bf16.gmra.mrb[4].mxu1 %v3244_v1 }
 0x16b   :  { %1007 = vmatpush1.bf16.msra.mxu1 %v2830_v44  ;;  %884 = vmatprep.mubr.bf16.mxu1 %v2944_v60 }
 0x16c   :  { %1008 = vmatprep.subr.bf16.mxu1 %v2835_v51  ;;  %2524 = vmatpush3.bf16.msra.mxu0 %v2901_v16 }
 0x16d   :  { %2525 = vmatprep.subr.bf16.mxu0 %v2945_v13 }
 0x16f   :  { %1009 = vmatpush1.bf16.msra.mxu1 %v2833_v46 }
 0x170   :  { %1010 = vmatprep.subr.bf16.mxu1 %v2838_v15  ;;  %2526 = vmatpush3.bf16.msra.mxu0 %v2902_v19 }
 0x171   :  { %2527 = vmatprep.subr.bf16.mxu0 %v2945_v13 }
 0x172   :  { %885 = vmatmul.mubr.bf16.gmra.mrb[8].mxu1 %v3264_v40 }
 0x173   :  { %1011 = vmatpush1.bf16.msra.mxu1 %v2836_v17  ;;  %894 = vmatprep.mubr.bf16.mxu1 %v2944_v60  ;;  %v2904_v17 = vld [vmem:[%s3752_s5 + $0x40] sm:$0xff]  }
 0x174   :  { %1012 = vmatprep.subr.bf16.mxu1 %v2841_v18  ;;  %2528 = vmatpush3.bf16.msra.mxu0 %v2903_v31 }
 0x175   :  { %2533 = vmatprep.subr.bf16.mxu0 %v2945_v13 }
 0x177   :  { %1013 = vmatpush1.bf16.msra.mxu1 %v2839_v20 }
 0x178   :  { %1014 = vmatprep.subr.bf16.mxu1 %v2844_v48  ;;  %v2905_v48 = vld [vmem:[%s3752_s5 + $0x48] sm:$0xff]  }
 0x17a   :  { %895 = vmatmul.mubr.bf16.gmra.mrb[12].mxu1 %v3292_v54 }
 0x17b   :  { %1015 = vmatpush1.bf16.msra.mxu1 %v2842_v49  ;;  %1034 = vmatprep.mubr.bf16.mxu1 %v2944_v60 }
 0x17c   :  { %1016 = vmatprep.subr.bf16.mxu1 %v2847_v50 }
 0x17f   :  { %1017 = vmatpush1.bf16.msra.mxu1 %v2845_v52 }
 0x180   :  { %1192 = vmatprep.subr.bf16.mxu1 %v2850_v53 }
 0x182   :  { %1035 = vmatmul.mubr.bf16.vlgmr.msra.gmra.mrb[0].mxu1 %v3244_v1  ;;  %v2859_v1 = vld [vmem:[%s3750_s3 + $0x1b4] ss:$8 sps:$4 sm:$0xff]  }
 0x183   :  { %1193 = vmatpush1.bf16.msra.mxu1 %v2848_v55  ;;  %1044 = vmatprep.mubr.bf16.mxu1 %v2944_v60 }
 0x184   :  { %1194 = vmatprep.subr.bf16.mxu1 %v2853_v56  ;;  %v2906_v56 = vld [vmem:[%s3752_s5 + $0x50] sm:$0xff]  }
 0x187   :  { %1195 = vmatpush1.bf16.msra.mxu1 %v2851_v57 }
 0x188   :  { %1196 = vmatprep.subr.bf16.mxu1 %v2856_v58 }
 0x18a   :  { %1045 = vmatmul.mubr.bf16.gmra.mrb[4].mxu1 %v3264_v40 }
 0x18b   :  { %1197 = vmatpush1.bf16.msra.mxu1 %v2854_v59  ;;  %1054 = vmatprep.mubr.bf16.mxu1 %v2944_v60  ;;  %v2907_v59 = vld [vmem:[%s3752_s5 + $0x58] sm:$0xff]  }
 0x18c   :  { %1198 = vmatprep.subr.bf16.mxu1 %v2859_v1 }
 0x18f   :  { %1199 = vmatpush1.bf16.msra.mxu1 %v2857_v61 }
 0x190   :  { %1200 = vmatprep.subr.bf16.mxu1 %v2862_v21 }
 0x192   :  { %1055 = vmatmul.mubr.bf16.gmra.mrb[8].mxu1 %v3292_v54 }
 0x193   :  { %1201 = vmatpush1.bf16.msra.mxu1 %v2860_v22  ;;  %1064 = vmatprep.mubr.bf16.mxu1 %v2944_v60 }
 0x194   :  { %1202 = vmatprep.subr.bf16.mxu1 %v2865_v23 }
 0x197   :  { %1203 = vmatpush1.bf16.msra.mxu1 %v2863_v24 }
 0x198   :  { %1204 = vmatprep.subr.bf16.mxu1 %v2868_v25  ;;  %v2908_v25 = vld [vmem:[%s3752_s5 + $0x60] sm:$0xff]  }
 0x19a   :  { %1065 = vmatmul.mubr.bf16.gmra.mrb[12].mxu1 %v3320_v5 }
 0x19b   :  { %1205 = vmatpush1.bf16.msra.mxu1 %v2866_v26  ;;  %1224 = vmatprep.mubr.bf16.mxu1 %v2944_v60 }
 0x19c   :  { %1206 = vmatprep.subr.bf16.mxu1 %v2871_v63 }
 0x19f   :  { %1207 = vmatpush1.bf16.msra.mxu1 %v2869_v0  ;;  %v2909_v0 = vld [vmem:[%s3752_s5 + $0x68] sm:$0xff]  }
 0x1a0   :  { %1378 = vmatprep.subr.bf16.mxu1 %v2874_v2 }
 0x1a2   :  { %1225 = vmatmul.mubr.bf16.vlgmr.msra.gmra.mrb[0].mxu1 %v3282_v47  ;;  %v2883_v47 = vld [vmem:[%s3750_s3 + $0x234] ss:$8 sps:$4 sm:$0xff]  }
 0x1a3   :  { %1379 = vmatpush1.bf16.msra.mxu1 %v2872_v3  ;;  %1234 = vmatprep.mubr.bf16.mxu1 %v2944_v60  ;;  %v2910_v3 = vld [vmem:[%s3752_s5 + $0x70] sm:$0xff]  }
 0x1a4   :  { %1380 = vmatprep.subr.bf16.mxu1 %v2877_v4 }
 0x1a7   :  { %1381 = vmatpush1.bf16.msra.mxu1 %v2875_v6  ;;  %v2911_v6 = vld [vmem:[%s3752_s5 + $0x78] sm:$0xff]  }
 0x1a8   :  { %1382 = vmatprep.subr.bf16.mxu1 %v2880_v7 }
 0x1aa   :  { %1235 = vmatmul.mubr.bf16.gmra.mrb[4].mxu1 %v3310_v62  ;;  %v2889_v62 = vld [vmem:[%s3750_s3 + $0x254] ss:$8 sps:$4 sm:$0xff]  }
 0x1ab   :  { %1383 = vmatpush1.bf16.msra.mxu1 %v2878_v8  ;;  %1244 = vmatprep.mubr.bf16.mxu1 %v2944_v60  ;;  %v2912_v8 = vld [vmem:[%s3752_s5 + $0x80] sm:$0xff]  }
 0x1ac   :  { %1384 = vmatprep.subr.bf16.mxu1 %v2883_v47 }
 0x1af   :  { %1385 = vmatpush1.bf16.msra.mxu1 %v2881_v9  ;;  %v2913_v9 = vld [vmem:[%s3752_s5 + $0x88] sm:$0xff]  }
 0x1b0   :  { %1386 = vmatprep.subr.bf16.mxu1 %v2886_v10  ;;  %v2914_v10 = vld [vmem:[%s3752_s5 + $0x90] sm:$0xff]  }
 0x1b2   :  { %1245 = vmatmul.mubr.bf16.gmra.mrb[8].mxu1 %v3338_v29  ;;  %v2895_v29 = vld [vmem:[%s3750_s3 + $0x274] ss:$8 sps:$4 sm:$0xff]  }
 0x1b3   :  { %1387 = vmatpush1.bf16.msra.mxu1 %v2884_v11  ;;  %1254 = vmatprep.mubr.bf16.mxu1 %v2944_v60  ;;  %v2915_v11 = vld [vmem:[%s3752_s5 + $0x98] sm:$0xff]  }
 0x1b4   :  { %1388 = vmatprep.subr.bf16.mxu1 %v2889_v62  ;;  %v2916_v62 = vld [vmem:[%s3752_s5 + $0xa0] sm:$0xff]  }
 0x1b7   :  { %1389 = vmatpush1.bf16.msra.mxu1 %v2887_v27  ;;  %v2917_v27 = vld [vmem:[%s3752_s5 + $0xa8] sm:$0xff]  }
 0x1b8   :  { %1390 = vmatprep.subr.bf16.mxu1 %v2892_v28  ;;  %v2918_v28 = vld [vmem:[%s3752_s5 + $0xb0] sm:$0xff]  }
 0x1ba   :  { %1255 = vmatmul.mubr.bf16.gmra.mrb[12].mxu1 %v3369_v39  ;;  %v2359_v39 = vld [vmem:[%s3754_s4] ss:$0 sm:$0xff] }
 0x1bb   :  { %1391 = vmatpush1.bf16.msra.mxu1 %v2890_v12  ;;  %1410 = vmatprep.mubr.bf16.mxu1 %v2944_v60  ;;  %v2919_v12 = vld [vmem:[%s3752_s5 + $0xb8] sm:$0xff]  }
 0x1bc   :  { %1392 = vmatprep.subr.bf16.mxu1 %v2895_v29 }
 0x1bf   :  { %1393 = vmatpush1.bf16.msra.mxu1 %v2893_v30  ;;  %v2920_v30 = vld [vmem:[%s3752_s5 + $0xc0] sm:$0xff]  }
 0x1c0   :  { %2593 = vmatprep.subr.bf16.mxu1 %v2945_v13 }
 0x1c2   :  { %1411 = vmatmul.mubr.bf16.vlgmr.msra.gmra.mrb[0].mxu1 %v3264_v40  ;;  %v2929_v40 = vld [vmem:[%s3753_s7 + $0x8] sm:$0xff]  }
 0x1c3   :  { %1420 = vmatprep.mubr.bf16.mxu1 %v2944_v60 }
 0x1ca   :  { %1421 = vmatmul.mubr.bf16.gmra.mrb[4].mxu1 %v3292_v54  ;;  %v2930_v54 = vld [vmem:[%s3753_s7 + $0x10] sm:$0xff]  }
 0x1cb   :  { %1430 = vmatprep.mubr.bf16.mxu1 %v2944_v60 }
 0x1d2   :  { %1431 = vmatmul.mubr.bf16.gmra.mrb[8].mxu1 %v3320_v5  ;;  %v2931_v5 = vld [vmem:[%s3753_s7 + $0x18] sm:$0xff]  }
 0x1d3   :  { %1440 = vmatprep.mubr.bf16.mxu1 %v2944_v60  ;;  %v2928_v60 = vld [vmem:[%s3753_s7] sm:$0xff]  }
 0x1d4   :  { %2594 = vmatpush3.bf16.msra.mxu1 %v2928_v60  ;;  %v2921_v60 = vld [vmem:[%s3752_s5 + $0xc8] sm:$0xff]  }
 0x1d5   :  { %2595 = vmatprep.subr.bf16.mxu1 %v2945_v13 }
 0x1d8   :  { %2596 = vmatpush3.bf16.msra.mxu1 %v2929_v40  ;;  %v2922_v40 = vld [vmem:[%s3752_s5 + $0xd0] sm:$0xff]  }
 0x1d9   :  { %2597 = vmatprep.subr.bf16.mxu1 %v2945_v13 }
 0x1da   :  { %1441 = vmatmul.mubr.bf16.gmra.mrb[12].mxu1 %v3352_v14 }
 0x1db   :  { %2609 = vmatprep.mubr.msk.bf16.mxu1 %vm2946_vm3, %v2945_v13 }
 0x1dc   :  { %2598 = vmatpush3.bf16.msra.mxu1 %v2930_v54  ;;  %v2923_v54 = vld [vmem:[%s3752_s5 + $0xd8] sm:$0xff]  }
 0x1dd   :  { %2599 = vmatprep.subr.bf16.mxu1 %v2945_v13 }
 0x1e0   :  { %2600 = vmatpush3.bf16.msra.mxu1 %v2931_v5  ;;  %v2924_v5 = vld [vmem:[%s3752_s5 + $0xe0] sm:$0xff]  }
 0x1e1   :  { %2601 = vmatprep.subr.bf16.mxu1 %v2945_v13 }
 0x1e4   :  { %2602 = vmatpush3.bf16.msra.mxu1 %v2932_v32  ;;  %v2925_v32 = vld [vmem:[%s3752_s5 + $0xe8] sm:$0xff]  }
 0x1e5   :  { %2603 = vmatprep.subr.bf16.mxu1 %v2945_v13 }
 0x1e8   :  { %2604 = vmatpush3.bf16.msra.mxu1 %v2933_v33 }
 0x1e9   :  { %2605 = vmatprep.subr.bf16.mxu1 %v2945_v13 }
 0x1ec   :  { %2606 = vmatpush3.bf16.msra.mxu1 %v2934_v41 }
 0x1ed   :  { %2607 = vmatprep.subr.bf16.mxu1 %v2945_v13 }
 0x295   :  { %v1412_v37 = vpop.f32.mrb[0].mxu1 }
 0x296   :  { %v1414_v14 = vpop.f32.mrb[1].mxu1 }
 0x297   :  { %v1468_v34 = vmax.f32 %v1412_v37, %v1414_v14  ;;  %v1416_v35 = vpop.f32.mrb[2].mxu1  ;;  %v2926_v37 = vld [vmem:[%s3752_s5 + $0xf0] sm:$0xff]   ;;  %v2927_v14 = vld [vmem:[%s3752_s5 + $0xf8] sm:$0xff]  }
 0x298   :  { %v1418_v36 = vpop.f32.mrb[3].mxu1 }
 0x299   :  { %v1469_v38 = vmax.f32 %v1416_v35, %v1418_v36  ;;  %v2935_v35 = vld [vmem:[%s3753_s7 + $0x38] sm:$0xff]   ;;  %v2368_v36 = vld [vmem:[%s3756_s6] ss:$0 sm:$0xff] }
 0x29a   :  { %2608 = vmatpush3.bf16.msra.mxu1 %v2935_v35 }
 0x29b   :  { %v1470_v42 = vmax.f32 %v1468_v34, %v1469_v38  ;;  %2613 = vmatprep.subr.bf16.mxu1 %v2945_v13 }
 0x29d   :  { %v1478_v43 = vadd.f32 %v2359_v39, %v1470_v42  ;;  %v1422_v44 = vpop.f32.mrb[4].mxu1 }
 0x29e   :  { %v1424_v51 = vpop.f32.mrb[5].mxu1 }
 0x29f   :  { %v1479_v45 = vmax.f32 %v1478_v43, 0.0  ;;  %v1592_v46 = vmax.f32 %v1422_v44, %v1424_v51  ;;  %v1426_v15 = vpop.f32.mrb[6].mxu1  ;;  %v2936_v51 = vld [vmem:[%s3755_s9] sm:$0xff]  }
 0x2a0   :  { %v1428_v16 = vpop.f32.mrb[7].mxu1 }
 0x2a1   :  { %v1480_v18 = vpack.c.bf16 %v1479_v45, %v1479_v45  ;;  %v1593_v19 = vmax.f32 %v1426_v15, %v1428_v16  ;;  %v2938_v15 = vld [vmem:[%s3755_s9 + $0x10] sm:$0xff]   ;;  %v2939_v16 = vld [vmem:[%s3755_s9 + $0x18] sm:$0xff]  }
 0x2a3   :  { %v1594_v20 = vmax.f32 %v1592_v46, %v1593_v19  ;;  %2530 = vmatmul.mubr.bf16.vlgmr.msra.gmra.mrb[48].mxu0 %v1480_v18  ;;  %v2937_v46 = vld [vmem:[%s3755_s9 + $0x8] sm:$0xff]   ;;  %v2942_v19 = vld [vmem:[%s3755_s9 + $0x30] sm:$0xff]  }
 0x2a4   :  { %2534 = vmatpush3.bf16.msra.mxu0 %v2904_v17  ;;  %2549 = vmatprep.mubr.msk.bf16.mxu0 %vm2946_vm3, %v2945_v13  ;;  %v2940_v17 = vld [vmem:[%s3755_s9 + $0x20] sm:$0xff]   ;;  %v2941_v18 = vld [vmem:[%s3755_s9 + $0x28] sm:$0xff]  }
 0x2a5   :  { %v1432_v49 = vpop.f32.mrb[8].mxu1  ;;  %2535 = vmatprep.subr.bf16.mxu0 %v2945_v13  ;;  %v1595_v4 = vadd.f32 %v2359_v39, %v1594_v20  ;;  %v2943_v20 = vld [vmem:[%s3755_s9 + $0x38] sm:$0xff]  }
 0x2a6   :  { %v1434_v50 = vpop.f32.mrb[9].mxu1 }
 0x2a7   :  { %v1704_v52 = vmax.f32 %v1432_v49, %v1434_v50  ;;  %v1436_v53 = vpop.f32.mrb[10].mxu1  ;;  %v1596_v7 = vmax.f32 %v1595_v4, 0.0 }
 0x2a8   :  { %2536 = vmatpush3.bf16.msra.mxu0 %v2905_v48  ;;  %v1438_v55 = vpop.f32.mrb[11].mxu1  ;;  %v2441_v48 = vld [vmem:[%s3757_s8] ss:$0 sm:$0xff] }
 0x2a9   :  { %v1705_v57 = vmax.f32 %v1436_v53, %v1438_v55  ;;  %2537 = vmatprep.subr.bf16.mxu0 %v2945_v13  ;;  %v1597_v47 = vpack.c.bf16 %v1596_v7, %v1596_v7 }
 0x2ab   :  { %v1706_v58 = vmax.f32 %v1704_v52, %v1705_v57 }
 0x2ac   :  { %2538 = vmatpush3.bf16.msra.mxu0 %v2906_v56 }
 0x2ad   :  { %v1707_v1 = vadd.f32 %v2359_v39, %v1706_v58  ;;  %v1442_v61 = vpop.f32.mrb[12].mxu1  ;;  %2539 = vmatprep.subr.bf16.mxu0 %v2945_v13 }
 0x2ae   :  { %v1444_v21 = vpop.f32.mrb[13].mxu1 }
 0x2af   :  { %v1816_v22 = vmax.f32 %v1442_v61, %v1444_v21  ;;  %v1446_v23 = vpop.f32.mrb[14].mxu1  ;;  %v1708_v29 = vmax.f32 %v1707_v1, 0.0 }
 0x2b0   :  { %2540 = vmatpush3.bf16.msra.mxu0 %v2907_v59  ;;  %v1448_v24 = vpop.f32.mrb[15].mxu1 }
 0x2b1   :  { %v1817_v26 = vmax.f32 %v1446_v23, %v1448_v24  ;;  %2541 = vmatprep.subr.bf16.mxu0 %v2945_v13  ;;  %v1709_v31 = vpack.c.bf16 %v1708_v29, %v1708_v29 }
 0x2b3   :  { %v1818_v63 = vmax.f32 %v1816_v22, %v1817_v26 }
 0x2b4   :  { %2542 = vmatpush3.bf16.msra.mxu0 %v2908_v25 }
 0x2b5   :  { %v3619_v2 = vadd.f32 %v2359_v39, %v1818_v63  ;;  %2543 = vmatprep.subr.bf16.mxu0 %v2945_v13 }
 0x2b7   :  { %v1820_v33 = vmax.f32 %v3619_v2, 0.0 }
 0x2b8   :  { %2544 = vmatpush3.bf16.msra.mxu0 %v2909_v0 }
 0x2b9   :  { %2545 = vmatprep.subr.bf16.mxu0 %v2945_v13  ;;  %v1821_v34 = vpack.c.bf16 %v1820_v33, %v1820_v33 }
 0x2bc   :  { %2546 = vmatpush3.bf16.msra.mxu0 %v2910_v3 }
 0x2bd   :  { %2547 = vmatprep.subr.bf16.mxu0 %v2945_v13 }
 0x2c0   :  { %2548 = vmatpush3.bf16.msra.mxu0 %v2911_v6 }
 0x2c1   :  { %2553 = vmatprep.subr.bf16.mxu0 %v2945_v13 }
 0x2c3   :  { %2550 = vmatmul.mubr.bf16.vlgmr.msra.gmra.mrb[48].mxu0 %v1597_v47 }
 0x2c4   :  { %2554 = vmatpush3.bf16.msra.mxu0 %v2912_v8  ;;  %2569 = vmatprep.mubr.msk.bf16.mxu0 %vm2946_vm3, %v2945_v13 }
 0x2c5   :  { %2555 = vmatprep.subr.bf16.mxu0 %v2945_v13 }
 0x2c8   :  { %2556 = vmatpush3.bf16.msra.mxu0 %v2913_v9 }
 0x2c9   :  { %2557 = vmatprep.subr.bf16.mxu0 %v2945_v13 }
 0x2cc   :  { %2558 = vmatpush3.bf16.msra.mxu0 %v2914_v10 }
 0x2cd   :  { %2559 = vmatprep.subr.bf16.mxu0 %v2945_v13 }
 0x2d0   :  { %2560 = vmatpush3.bf16.msra.mxu0 %v2915_v11 }
 0x2d1   :  { %2561 = vmatprep.subr.bf16.mxu0 %v2945_v13 }
 0x2d4   :  { %2562 = vmatpush3.bf16.msra.mxu0 %v2916_v62 }
 0x2d5   :  { %2563 = vmatprep.subr.bf16.mxu0 %v2945_v13 }
 0x2d8   :  { %2564 = vmatpush3.bf16.msra.mxu0 %v2917_v27 }
 0x2d9   :  { %2565 = vmatprep.subr.bf16.mxu0 %v2945_v13 }
 0x2dc   :  { %2566 = vmatpush3.bf16.msra.mxu0 %v2918_v28 }
 0x2dd   :  { %2567 = vmatprep.subr.bf16.mxu0 %v2945_v13 }
 0x2e0   :  { %2568 = vmatpush3.bf16.msra.mxu0 %v2919_v12 }
 0x2e1   :  { %2573 = vmatprep.subr.bf16.mxu0 %v2945_v13 }
 0x2e3   :  { %2570 = vmatmul.mubr.bf16.vlgmr.msra.gmra.mrb[48].mxu0 %v1709_v31 }
 0x2e4   :  { %2574 = vmatpush3.bf16.msra.mxu0 %v2920_v30  ;;  %2589 = vmatprep.mubr.msk.bf16.mxu0 %vm2946_vm3, %v2945_v13 }
 0x2e5   :  { %2575 = vmatprep.subr.bf16.mxu0 %v2945_v13 }
 0x2e8   :  { %2576 = vmatpush3.bf16.msra.mxu0 %v2921_v60 }
 0x2e9   :  { %2577 = vmatprep.subr.bf16.mxu0 %v2945_v13 }
 0x2ec   :  { %2578 = vmatpush3.bf16.msra.mxu0 %v2922_v40 }
 0x2ed   :  { %2579 = vmatprep.subr.bf16.mxu0 %v2945_v13 }
 0x2f0   :  { %2580 = vmatpush3.bf16.msra.mxu0 %v2923_v54 }
 0x2f1   :  { %2581 = vmatprep.subr.bf16.mxu0 %v2945_v13 }
 0x2f4   :  { %2582 = vmatpush3.bf16.msra.mxu0 %v2924_v5 }
 0x2f5   :  { %2583 = vmatprep.subr.bf16.mxu0 %v2945_v13 }
 0x2f8   :  { %2584 = vmatpush3.bf16.msra.mxu0 %v2925_v32 }
 0x2f9   :  { %2585 = vmatprep.subr.bf16.mxu0 %v2945_v13 }
 0x2fc   :  { %2586 = vmatpush3.bf16.msra.mxu0 %v2926_v37 }
 0x2fd   :  { %2587 = vmatprep.subr.bf16.mxu0 %v2945_v13 }
 0x300   :  { %2588 = vmatpush3.bf16.msra.mxu0 %v2927_v14 }
 0x303   :  { %2590 = vmatmul.mubr.bf16.vlgmr.msra.gmra.mrb[48].mxu0 %v1821_v34 }
 0x3d6   :  { %v1921_v38 = vpop.f32.mrb[48].mxu0 }
 0x3d7   :  { %v2633_v39 = vadd.f32 %v2368_v36, %v1921_v38  ;;  %v2591_v41 = vpop.f32.mrb[49].mxu0 }
 0x3d8   :  { %v1924_v42 = vpop.f32.mrb[50].mxu0 }
 0x3d9   :  { %v1928_v43 = vmax.f32 %v2633_v39, 0.0  ;;  %v2592_v44 = vpop.f32.mrb[51].mxu0 }
 0x3db   :  { %v1929_v45 = vpack.c.bf16 %v1928_v43, %v1928_v43 }
 0x3dd   :  { %2610 = vmatmul.mubr.bf16.vlgmr.msra.gmra.mrb[16].mxu1 %v1929_v45 }
 0x3de   :  { %2614 = vmatpush3.bf16.msra.mxu1 %v2936_v51  ;;  %2629 = vmatprep.mubr.msk.bf16.mxu1 %vm2946_vm3, %v2945_v13 }
 0x3df   :  { %2615 = vmatprep.subr.bf16.mxu1 %v2945_v13 }
 0x3e2   :  { %2616 = vmatpush3.bf16.msra.mxu1 %v2937_v46 }
 0x3e3   :  { %2617 = vmatprep.subr.bf16.mxu1 %v2945_v13 }
 0x3e6   :  { %2618 = vmatpush3.bf16.msra.mxu1 %v2938_v15 }
 0x3e7   :  { %2619 = vmatprep.subr.bf16.mxu1 %v2945_v13 }
 0x3ea   :  { %2620 = vmatpush3.bf16.msra.mxu1 %v2939_v16 }
 0x3eb   :  { %2621 = vmatprep.subr.bf16.mxu1 %v2945_v13 }
 0x3ee   :  { %2622 = vmatpush3.bf16.msra.mxu1 %v2940_v17 }
 0x3ef   :  { %2623 = vmatprep.subr.bf16.mxu1 %v2945_v13 }
 0x3f2   :  { %2624 = vmatpush3.bf16.msra.mxu1 %v2941_v18 }
 0x3f3   :  { %2625 = vmatprep.subr.bf16.mxu1 %v2945_v13 }
 0x3f6   :  { %2626 = vmatpush3.bf16.msra.mxu1 %v2942_v19 }
 0x3f7   :  { %2627 = vmatprep.subr.bf16.mxu1 %v2945_v13  ;;  %v2450_v13 = vld [vmem:[%s3758_s10] ss:$0 sm:$0xff] }
 0x3fa   :  { %2628 = vmatpush3.bf16.msra.mxu1 %v2943_v20 }
 0x4b0   :  { %v2035_v49 = vpop.f32.mrb[16].mxu1 }
 0x4b1   :  { %v2036_v50 = vadd.f32 %v2441_v48, %v2035_v49  ;;  %v2611_v52 = vpop.f32.mrb[17].mxu1 }
 0x4b2   :  { %v2038_v53 = vpop.f32.mrb[18].mxu1 }
 0x4b3   :  { %v2041_v55 = vmax.f32 %v2036_v50, 0.0  ;;  %v2612_v56 = vpop.f32.mrb[19].mxu1 }
 0x4b5   :  { %v2042_v57 = vpack.c.bf16 %v2041_v55, %v2041_v55 }
 0x4b7   :  { %2630 = vmatmul.mubr.bf16.vlgmr.msra.gmra.mrb[20].mxu1 %v2042_v57 }
 0x58a   :  { %v2148_v58 = vpop.f32.mrb[20].mxu1 }
 0x58b   :  { %v2149_v59 = vadd.f32 %v2450_v13, %v2148_v58  ;;  %v2631_v1 = vpop.f32.mrb[21].mxu1 }
 0x58c   :  { %v2151_v61 = vpop.f32.mrb[22].mxu1 }
 0x58d   :  { %2154 = vst [vmem:[%s3759_s11] sm:$0xff] %v2149_v59  ;;  %v2632_v21 = vpop.f32.mrb[23].mxu1 }

</bundles_post_ra>
